<compile_context>
chip_gen: v7x
topology: tpu7x:2x2x1
jax: 0.10.0
libtpu: 0.0.40
codegen_flags: <defaults>
</compile_context>

<pallas_src>
import functools

import jax
import jax.numpy as jnp
from jax import lax
from jax.experimental import pallas as pl
from jax.experimental.pallas import tpu as pltpu

BN_EPS = 1e-5
IN_EPS = 1e-5


# --------------------------------- Pallas kernel ------------------------------

def _hswish(v):
  return v * (jnp.clip(v + 3.0, 0.0, 6.0) * (1.0 / 6.0))


def _block_kernel(shifts, inp,
                  x_ref,
                  sel_ref,
                  p1_ref, pw1_ref, b1_ref,
                  p2_ref, pw2_ref, b2_ref,
                  p3_ref, pw3_ref,
                  sew1_ref, seb_ref, sew2_ref,
                  o_ref):
  """One batch element: (C, H*W) in -> (inp + outputs, H*W) out."""
  xf = x_ref[0]                                  # (C, HW) f32, lane-dense
  hw = xf.shape[-1]
  inv_hw = 1.0 / float(hw)

  # x_proj passthrough (even channels of channel_shuffle) via 0/1 selection
  # matmul, written straight into the first half of the fused output (concat).
  o_ref[0, :inp, :] = jnp.dot(
      sel_ref[...], xf, preferred_element_type=jnp.float32).astype(o_ref.dtype)

  def dw_conv(v, planes_ref):
    # 3x3 depthwise conv = 9 lane rolls (XLU) + FMAs against masked,
    # BN-folded per-tap weight planes (zero padding folded into the planes).
    acc = None
    for tap, s in enumerate(shifts):
      vs = v if s == 0 else pltpu.roll(v, (-s) % hw, axis=1)
      term = vs * planes_ref[tap]
      acc = term if acc is None else acc + term
    return acc

  # [0..4]   dw3x3 + BN | 1x1 (inp -> mid) + BN + HS        (BN folded)
  t = dw_conv(xf, p1_ref)
  t = _hswish(jnp.dot(pw1_ref[...], t, preferred_element_type=jnp.float32)
              + b1_ref[...])
  # [5..9]   dw3x3 + BN | 1x1 (mid -> mid) + BN + HS
  t = dw_conv(t, p2_ref)
  t = _hswish(jnp.dot(pw2_ref[...], t, preferred_element_type=jnp.float32)
              + b2_ref[...])
  # [10..12] dw3x3 + BN | 1x1 (mid -> outputs)
  t = dw_conv(t, p3_ref)
  t = jnp.dot(pw3_ref[...], t, preferred_element_type=jnp.float32)
  # [13..14] InstanceNorm2d(affine=False) + HS  (per sample / per channel)
  mu = jnp.sum(t, axis=1, keepdims=True) * inv_hw
  tc = t - mu
  var = jnp.sum(tc * tc, axis=1, keepdims=True) * inv_hw
  t = _hswish(tc * lax.rsqrt(var + IN_EPS))
  # SELayer: GAP -> 1x1 -> BN -> ReLU -> 1x1 -> hard-sigmoid -> scale.
  pooled = jnp.sum(t, axis=1, keepdims=True) * inv_hw             # (Co, 1)
  pooled_b = jnp.broadcast_to(pooled, t.shape)                    # (Co, HW)
  a = jnp.dot(sew1_ref[...], pooled_b,
              preferred_element_type=jnp.float32) + seb_ref[...]
  a = jnp.maximum(a, 0.0)
  a = jnp.dot(sew2_ref[...], a, preferred_element_type=jnp.float32)
  a = jnp.clip(a + 3.0, 0.0, 6.0) * (1.0 / 6.0)

  o_ref[0, inp:, :] = (t * a).astype(o_ref.dtype)


def ibn_shuffle_xception_forward(kp, old_x_nchw, *, mode=1, dilation=1):
  # TODO(synk): mode=2 (branch_proj) and the stride=2 downsampling variant are
  # not implemented; only the mode=1 / stride=1 block is covered here.
  assert mode == 1
  n, c, h, w = old_x_nchw.shape
  assert c % 4 == 0
  inp = c // 2
  outputs = kp["pw3"].shape[0]
  oup = inp + outputs
  hw = h * w

  xf = old_x_nchw.reshape(n, c, hw)              # free reshape, stays NCHW
  shifts = tuple((ky - 1) * dilation * w + (kx - 1) * dilation
                 for ky in range(3) for kx in range(3))

  def resident(arr):                             # whole-array, DMA'd once
    nd = arr.ndim
    return pl.BlockSpec(arr.shape, lambda b, nd=nd: (0,) * nd)

  weights = (kp["sel"],
             kp["planes1"], kp["pw1"], kp["bias1"],
             kp["planes2"], kp["pw2"], kp["bias2"],
             kp["planes3"], kp["pw3"],
             kp["se_w1"], kp["se_b"], kp["se_w2"])

  out = pl.pallas_call(
      functools.partial(_block_kernel, shifts, inp),
      out_shape=jax.ShapeDtypeStruct((n, oup, hw), jnp.float32),
      grid=(n,),
      in_specs=[pl.BlockSpec((1, c, hw), lambda b: (b, 0, 0))]
               + [resident(wt) for wt in weights],
      out_specs=pl.BlockSpec((1, oup, hw), lambda b: (b, 0, 0)),
      compiler_params=pltpu.CompilerParams(
          dimension_semantics=("parallel",)),
  )(xf, *weights)
  return out.reshape(n, oup, h, w)


# ------------------------- host-side parameter folding ------------------------

def prepare_kernel_params(params, c_full, h, w, dilation):
  """Fold BN into conv weights and build lane-dense kernel operands."""
  inp = params["dw1"].shape[1]
  mid = params["pw1"].shape[1]
  outputs = params["pw3"].shape[1]
  hw = h * w
  f32 = jnp.float32

  # Per-tap validity masks for a 3x3 depthwise conv on the flattened H*W axis
  # (zero padding folded into the weights).
  hh = jnp.arange(h)[:, None]
  ww = jnp.arange(w)[None, :]
  masks = []
  for ky in range(3):
    for kx in range(3):
      dy, dx = (ky - 1) * dilation, (kx - 1) * dilation
      valid = ((hh + dy >= 0) & (hh + dy < h) &
               (ww + dx >= 0) & (ww + dx < w))
      masks.append(valid.reshape(hw).astype(f32))
  masks = jnp.stack(masks, axis=0)                          # (9, HW)

  def dw_planes(w9c, scale):                                # (9,C) -> (9,C,HW)
    taps = w9c * scale[None, :]
    return taps[:, :, None] * masks[:, None, :]

  flat = lambda v: v.reshape(-1)
  s1, b1 = flat(params["s1"]), flat(params["b1"])
  s2, b2 = flat(params["s2"]), flat(params["b2"])
  s3, b3 = flat(params["s3"]), flat(params["b3"])
  s4, b4 = flat(params["s4"]), flat(params["b4"])
  s5 = flat(params["s5"])
  se_s, se_b = flat(params["se_s"]), flat(params["se_b"])

  # The branch operates on the odd channels of the interleaved input; zero-pad
  # its first depthwise / pointwise weights so the kernel never has to gather.
  planes1 = jnp.zeros((9, c_full, hw), f32).at[:, 1::2, :].set(
      dw_planes(params["dw1"], s1))
  pw1 = jnp.zeros((mid, c_full), f32).at[:, 1::2].set(
      params["pw1"].T * s2[:, None])
  bias1 = (s2 * (params["pw1"].T @ b1) + b2)[:, None]       # (mid, 1)

  planes2 = dw_planes(params["dw2"], s3)                    # (9, mid, HW)
  pw2 = params["pw2"].T * s4[:, None]                       # (mid, mid)
  bias2 = (s4 * (params["pw2"].T @ b3) + b4)[:, None]

  planes3 = dw_planes(params["dw3"], s5)                    # (9, mid, HW)
  pw3 = params["pw3"].T                                     # (outputs, mid)
  # NOTE: the BN bias after dw3 (b5) only adds a per-channel constant after
  # pw3, which the InstanceNorm mean-subtraction cancels exactly -> dropped.

  # x_proj passthrough (even channels) as a 0/1 selection matrix.
  sel = (jnp.arange(c_full)[None, :] ==
         2 * jnp.arange(inp)[:, None]).astype(f32)          # (inp, C)

  se_w1 = params["se_w1"].T * se_s[:, None]                 # (out//4, out)
  se_w2 = params["se_w2"].T                                 # (out, out//4)

  return dict(sel=sel,
              planes1=planes1, pw1=pw1, bias1=bias1,
              planes2=planes2, pw2=pw2, bias2=bias2,
              planes3=planes3, pw3=pw3,
              se_w1=se_w1, se_b=se_b[:, None], se_w2=se_w2)


# --------------------------------- parameters ---------------------------------

def _fold_bn(gamma, beta, mean, var, eps=BN_EPS):
  scale = gamma / jnp.sqrt(var + eps)
  return scale, beta - mean * scale


def _bn_params(key, c):
  k1, k2, k3, k4 = jax.random.split(key, 4)
  gamma = 1.0 + 0.1 * jax.random.normal(k1, (c,), jnp.float32)
  beta = 0.1 * jax.random.normal(k2, (c,), jnp.float32)
  mean = 0.1 * jax.random.normal(k3, (c,), jnp.float32)
  var = 0.5 + jax.random.uniform(k4, (c,), jnp.float32)
  s, b = _fold_bn(gamma, beta, mean, var)
  return s.reshape(1, c), b.reshape(1, c)


def init_params(key, inp, mid, outputs):
  ks = jax.random.split(key, 14)
  w = lambda k, shape: 0.2 * jax.random.normal(k, shape, jnp.float32)
  p = {}
  p["dw1"] = w(ks[0], (9, inp))            # torch (inp,1,3,3) -> (ky*3+kx, C)
  p["s1"], p["b1"] = _bn_params(ks[1], inp)
  p["pw1"] = w(ks[2], (inp, mid))          # torch (mid,inp,1,1) -> (Cin, Cout)
  p["s2"], p["b2"] = _bn_params(ks[3], mid)
  p["dw2"] = w(ks[4], (9, mid))
  p["s3"], p["b3"] = _bn_params(ks[5], mid)
  p["pw2"] = w(ks[6], (mid, mid))
  p["s4"], p["b4"] = _bn_params(ks[7], mid)
  p["dw3"] = w(ks[8], (9, mid))
  p["s5"], p["b5"] = _bn_params(ks[9], mid)
  p["pw3"] = w(ks[10], (mid, outputs))
  p["se_w1"] = w(ks[11], (outputs, outputs // 4))
  p["se_s"], p["se_b"] = _bn_params(ks[12], outputs // 4)
  p["se_w2"] = w(ks[13], (outputs // 4, outputs))
  return p


# ----------------------- pure-JAX reference (for validation) ------------------

def channel_shuffle(x):
  """Literal port of the PyTorch channel_shuffle (NCHW)."""
  b, c, h, w = x.shape
  assert c % 4 == 0
  x = x.reshape(b * c // 2, 2, h * w)
  x = jnp.transpose(x, (1, 0, 2))
  x = x.reshape(2, -1, c // 2, h, w)
  return x[0], x[1]


def _affine(x, scale, bias):
  c = x.shape[-1]
  return x * scale.reshape(1, 1, 1, c) + bias.reshape(1, 1, 1, c)


def _hs(x):
  return x * (jnp.clip(x + 3.0, 0.0, 6.0) / 6.0)


def _mean_hw(x):
  n, h, w, c = x.shape
  s = jnp.sum(x, axis=2, keepdims=True)
  s = jnp.sum(s, axis=1, keepdims=True)
  return s * (1.0 / float(h * w))


def _ref_dw(x, w9c, d):
  c = x.shape[-1]
  rhs = w9c.reshape(3, 3, 1, c)
  return lax.conv_general_dilated(
      x, rhs, window_strides=(1, 1), padding=[(d, d), (d, d)],
      rhs_dilation=(d, d), dimension_numbers=("NHWC", "HWIO", "NHWC"),
      feature_group_count=c)


def _ref_pw(x, wmat):
  rhs = wmat[None, None, :, :]
  return lax.conv_general_dilated(
      x, rhs, window_strides=(1, 1), padding="VALID",
      dimension_numbers=("NHWC", "HWIO", "NHWC"))


def reference_forward(params, old_x, dilation):
  x_proj, x = channel_shuffle(old_x)
  t = jnp.transpose(x, (0, 2, 3, 1))
  t = _affine(_ref_dw(t, params["dw1"], dilation), params["s1"], params["b1"])
  t = _hs(_affine(_ref_pw(t, params["pw1"]), params["s2"], params["b2"]))
  t = _affine(_ref_dw(t, params["dw2"], dilation), params["s3"], params["b3"])
  t = _hs(_affine(_ref_pw(t, params["pw2"]), params["s4"], params["b4"]))
  t = _affine(_ref_dw(t, params["dw3"], dilation), params["s5"], params["b5"])
  t = _ref_pw(t, params["pw3"])
  mu = _mean_hw(t)
  var = _mean_hw((t - mu) ** 2)
  t = _hs((t - mu) * lax.rsqrt(var + IN_EPS))
  n, h, w, co = t.shape
  pooled = _mean_hw(t).reshape(n, co)
  a = (pooled @ params["se_w1"]) * params["se_s"] + params["se_b"]
  a = jnp.maximum(a, 0.0) @ params["se_w2"]
  a = jnp.clip(a + 3.0, 0.0, 6.0) / 6.0
  t = t * a.reshape(n, 1, 1, co)
  y = jnp.transpose(t, (0, 3, 1, 2))
  return jnp.concatenate([x_proj, y], axis=1)


# ------------------------------------ main -------------------------------------

if __name__ == "__main__":
  key = jax.random.PRNGKey(0)
  k_params, k_x = jax.random.split(key)

  # old_x in PyTorch NCHW layout
  N, C, H, W = 2, 32, 16, 16
  inp, oup = C // 2, C          # mode=1: channel shuffle halves the channels
  mid = oup // 2                # base_mid_channels == oup // 2
  outputs = oup - inp
  dilation = 1

  params = init_params(k_params, inp, mid, outputs)
  x = jax.random.normal(k_x, (N, C, H, W), jnp.float32)

  kparams = prepare_kernel_params(params, C, H, W, dilation)
  fwd = jax.jit(functools.partial(ibn_shuffle_xception_forward,
                                  mode=1, dilation=dilation))
  out = jax.block_until_ready(fwd(kparams, x))
  assert out.shape == (N, oup, H, W), out.shape

  ref = reference_forward(params, x, dilation)
  err = float(jnp.max(jnp.abs(out - ref)))
  if err > 2e-3:
    raise AssertionError(f"Pallas output mismatch vs JAX reference: max abs err {err}")

  print("KERNEL_OK")
</pallas_src>

<mosaic_0001>
module attributes {stable_mosaic.version = 11 : i64} {
  func.func @_block_kernel(%arg0: i32, %arg1: memref<1x32x256xf32, #tpu.memory_space<vmem>>, %arg2: memref<16x32xf32, #tpu.memory_space<vmem>>, %arg3: memref<9x32x256xf32, #tpu.memory_space<vmem>>, %arg4: memref<16x32xf32, #tpu.memory_space<vmem>>, %arg5: memref<16x1xf32, #tpu.memory_space<vmem>>, %arg6: memref<9x16x256xf32, #tpu.memory_space<vmem>>, %arg7: memref<16x16xf32, #tpu.memory_space<vmem>>, %arg8: memref<16x1xf32, #tpu.memory_space<vmem>>, %arg9: memref<9x16x256xf32, #tpu.memory_space<vmem>>, %arg10: memref<16x16xf32, #tpu.memory_space<vmem>>, %arg11: memref<4x16xf32, #tpu.memory_space<vmem>>, %arg12: memref<4x1xf32, #tpu.memory_space<vmem>>, %arg13: memref<16x4xf32, #tpu.memory_space<vmem>>, %arg14: memref<1x32x256xf32, #tpu.memory_space<vmem>>) attributes {dimension_semantics = [#tpu.dimension_semantics<parallel>], iteration_bounds = array<i64: 2>, scalar_prefetch = 0 : i64, scratch_operands = 0 : i64, tpu.core_type = #tpu.core_type<tc>, window_params = [{transform_indices = @transform_0, window_bounds = array<i64: 1, 32, 256>}, {pipeline_mode = #tpu.pipeline_mode<synchronous>, transform_indices = @transform_1, window_bounds = array<i64: 16, 32>}, {pipeline_mode = #tpu.pipeline_mode<synchronous>, transform_indices = @transform_2, window_bounds = array<i64: 9, 32, 256>}, {pipeline_mode = #tpu.pipeline_mode<synchronous>, transform_indices = @transform_3, window_bounds = array<i64: 16, 32>}, {pipeline_mode = #tpu.pipeline_mode<synchronous>, transform_indices = @transform_4, window_bounds = array<i64: 16, 1>}, {pipeline_mode = #tpu.pipeline_mode<synchronous>, transform_indices = @transform_5, window_bounds = array<i64: 9, 16, 256>}, {pipeline_mode = #tpu.pipeline_mode<synchronous>, transform_indices = @transform_6, window_bounds = array<i64: 16, 16>}, {pipeline_mode = #tpu.pipeline_mode<synchronous>, transform_indices = @transform_7, window_bounds = array<i64: 16, 1>}, {pipeline_mode = #tpu.pipeline_mode<synchronous>, transform_indices = @transform_8, window_bounds = array<i64: 9, 16, 256>}, {pipeline_mode = #tpu.pipeline_mode<synchronous>, transform_indices = @transform_9, window_bounds = array<i64: 16, 16>}, {pipeline_mode = #tpu.pipeline_mode<synchronous>, transform_indices = @transform_10, window_bounds = array<i64: 4, 16>}, {pipeline_mode = #tpu.pipeline_mode<synchronous>, transform_indices = @transform_11, window_bounds = array<i64: 4, 1>}, {pipeline_mode = #tpu.pipeline_mode<synchronous>, transform_indices = @transform_12, window_bounds = array<i64: 16, 4>}, {transform_indices = @transform_13, window_bounds = array<i64: 1, 32, 256>}]} {
    %c0 = arith.constant 0 : index
    %c0_0 = arith.constant 0 : index
    %c0_1 = arith.constant 0 : index
    %0 = vector.load %arg1[%c0, %c0_0, %c0_1] : memref<1x32x256xf32, #tpu.memory_space<vmem>>, vector<1x32x256xf32>
    %1 = vector.shape_cast %0 : vector<1x32x256xf32> to vector<32x256xf32>
    %c0_2 = arith.constant 0 : index
    %c0_3 = arith.constant 0 : index
    %2 = vector.load %arg2[%c0_2, %c0_3] : memref<16x32xf32, #tpu.memory_space<vmem>>, vector<16x32xf32>
    %cst = arith.constant dense<0.000000e+00> : vector<16x256xf32>
    %3 = tpu.matmul %2, %1, %cst {dimension_numbers = #tpu.dot_dimension_numbers<[1], [0], [0], [1], [0, 0, 1, 1], [], []>} : vector<16x32xf32>, vector<32x256xf32>, vector<16x256xf32> -> vector<16x256xf32>
    %c0_4 = arith.constant 0 : index
    %c0_5 = arith.constant 0 : index
    %c0_6 = arith.constant 0 : index
    %4 = vector.load %arg14[%c0_4, %c0_5, %c0_6] : memref<1x32x256xf32, #tpu.memory_space<vmem>>, vector<1x16x256xf32>
    %5 = vector.shape_cast %4 : vector<1x16x256xf32> to vector<16x256xf32>
    %6 = vector.shape_cast %3 : vector<16x256xf32> to vector<1x16x256xf32>
    tpu.vector_store %arg14[%c0_4, %c0_5, %c0_6], %6 {strides = array<i32>} : memref<1x32x256xf32, #tpu.memory_space<vmem>>, vector<1x16x256xf32>,
    %c17_i32 = arith.constant 17 : i32
    %7 = tpu.dynamic_rotate %1 by %c17_i32 dim 1 : vector<32x256xf32>, i32 -> vector<32x256xf32>
    %c0_7 = arith.constant 0 : index
    %c0_8 = arith.constant 0 : index
    %c0_9 = arith.constant 0 : index
    %8 = vector.load %arg3[%c0_7, %c0_8, %c0_9] : memref<9x32x256xf32, #tpu.memory_space<vmem>>, vector<1x32x256xf32>
    %9 = vector.shape_cast %8 : vector<1x32x256xf32> to vector<32x256xf32>
    %10 = arith.mulf %7, %9 : vector<32x256xf32>
    %c16_i32 = arith.constant 16 : i32
    %11 = tpu.dynamic_rotate %1 by %c16_i32 dim 1 : vector<32x256xf32>, i32 -> vector<32x256xf32>
    %c1 = arith.constant 1 : index
    %c0_10 = arith.constant 0 : index
    %c0_11 = arith.constant 0 : index
    %12 = vector.load %arg3[%c1, %c0_10, %c0_11] : memref<9x32x256xf32, #tpu.memory_space<vmem>>, vector<1x32x256xf32>
    %13 = vector.shape_cast %12 : vector<1x32x256xf32> to vector<32x256xf32>
    %14 = arith.mulf %11, %13 : vector<32x256xf32>
    %15 = arith.addf %10, %14 : vector<32x256xf32>
    %c15_i32 = arith.constant 15 : i32
    %16 = tpu.dynamic_rotate %1 by %c15_i32 dim 1 : vector<32x256xf32>, i32 -> vector<32x256xf32>
    %c2 = arith.constant 2 : index
    %c0_12 = arith.constant 0 : index
    %c0_13 = arith.constant 0 : index
    %17 = vector.load %arg3[%c2, %c0_12, %c0_13] : memref<9x32x256xf32, #tpu.memory_space<vmem>>, vector<1x32x256xf32>
    %18 = vector.shape_cast %17 : vector<1x32x256xf32> to vector<32x256xf32>
    %19 = arith.mulf %16, %18 : vector<32x256xf32>
    %20 = arith.addf %15, %19 : vector<32x256xf32>
    %c1_i32 = arith.constant 1 : i32
    %21 = tpu.dynamic_rotate %1 by %c1_i32 dim 1 : vector<32x256xf32>, i32 -> vector<32x256xf32>
    %c3 = arith.constant 3 : index
    %c0_14 = arith.constant 0 : index
    %c0_15 = arith.constant 0 : index
    %22 = vector.load %arg3[%c3, %c0_14, %c0_15] : memref<9x32x256xf32, #tpu.memory_space<vmem>>, vector<1x32x256xf32>
    %23 = vector.shape_cast %22 : vector<1x32x256xf32> to vector<32x256xf32>
    %24 = arith.mulf %21, %23 : vector<32x256xf32>
    %25 = arith.addf %20, %24 : vector<32x256xf32>
    %c4 = arith.constant 4 : index
    %c0_16 = arith.constant 0 : index
    %c0_17 = arith.constant 0 : index
    %26 = vector.load %arg3[%c4, %c0_16, %c0_17] : memref<9x32x256xf32, #tpu.memory_space<vmem>>, vector<1x32x256xf32>
    %27 = vector.shape_cast %26 : vector<1x32x256xf32> to vector<32x256xf32>
    %28 = arith.mulf %1, %27 : vector<32x256xf32>
    %29 = arith.addf %25, %28 : vector<32x256xf32>
    %c255_i32 = arith.constant 255 : i32
    %30 = tpu.dynamic_rotate %1 by %c255_i32 dim 1 : vector<32x256xf32>, i32 -> vector<32x256xf32>
    %c5 = arith.constant 5 : index
    %c0_18 = arith.constant 0 : index
    %c0_19 = arith.constant 0 : index
    %31 = vector.load %arg3[%c5, %c0_18, %c0_19] : memref<9x32x256xf32, #tpu.memory_space<vmem>>, vector<1x32x256xf32>
    %32 = vector.shape_cast %31 : vector<1x32x256xf32> to vector<32x256xf32>
    %33 = arith.mulf %30, %32 : vector<32x256xf32>
    %34 = arith.addf %29, %33 : vector<32x256xf32>
    %c241_i32 = arith.constant 241 : i32
    %35 = tpu.dynamic_rotate %1 by %c241_i32 dim 1 : vector<32x256xf32>, i32 -> vector<32x256xf32>
    %c6 = arith.constant 6 : index
    %c0_20 = arith.constant 0 : index
    %c0_21 = arith.constant 0 : index
    %36 = vector.load %arg3[%c6, %c0_20, %c0_21] : memref<9x32x256xf32, #tpu.memory_space<vmem>>, vector<1x32x256xf32>
    %37 = vector.shape_cast %36 : vector<1x32x256xf32> to vector<32x256xf32>
    %38 = arith.mulf %35, %37 : vector<32x256xf32>
    %39 = arith.addf %34, %38 : vector<32x256xf32>
    %c240_i32 = arith.constant 240 : i32
    %40 = tpu.dynamic_rotate %1 by %c240_i32 dim 1 : vector<32x256xf32>, i32 -> vector<32x256xf32>
    %c7 = arith.constant 7 : index
    %c0_22 = arith.constant 0 : index
    %c0_23 = arith.constant 0 : index
    %41 = vector.load %arg3[%c7, %c0_22, %c0_23] : memref<9x32x256xf32, #tpu.memory_space<vmem>>, vector<1x32x256xf32>
    %42 = vector.shape_cast %41 : vector<1x32x256xf32> to vector<32x256xf32>
    %43 = arith.mulf %40, %42 : vector<32x256xf32>
    %44 = arith.addf %39, %43 : vector<32x256xf32>
    %c239_i32 = arith.constant 239 : i32
    %45 = tpu.dynamic_rotate %1 by %c239_i32 dim 1 : vector<32x256xf32>, i32 -> vector<32x256xf32>
    %c8 = arith.constant 8 : index
    %c0_24 = arith.constant 0 : index
    %c0_25 = arith.constant 0 : index
    %46 = vector.load %arg3[%c8, %c0_24, %c0_25] : memref<9x32x256xf32, #tpu.memory_space<vmem>>, vector<1x32x256xf32>
    %47 = vector.shape_cast %46 : vector<1x32x256xf32> to vector<32x256xf32>
    %48 = arith.mulf %45, %47 : vector<32x256xf32>
    %49 = arith.addf %44, %48 : vector<32x256xf32>
    %c0_26 = arith.constant 0 : index
    %c0_27 = arith.constant 0 : index
    %50 = vector.load %arg4[%c0_26, %c0_27] : memref<16x32xf32, #tpu.memory_space<vmem>>, vector<16x32xf32>
    %cst_28 = arith.constant dense<0.000000e+00> : vector<16x256xf32>
    %51 = tpu.matmul %50, %49, %cst_28 {dimension_numbers = #tpu.dot_dimension_numbers<[1], [0], [0], [1], [0, 0, 1, 1], [], []>} : vector<16x32xf32>, vector<32x256xf32>, vector<16x256xf32> -> vector<16x256xf32>
    %c0_29 = arith.constant 0 : index
    %c0_30 = arith.constant 0 : index
    %52 = vector.load %arg5[%c0_29, %c0_30] : memref<16x1xf32, #tpu.memory_space<vmem>>, vector<16x1xf32>
    %53 = vector.broadcast %52 : vector<16x1xf32> to vector<16x256xf32>
    %54 = arith.addf %51, %53 : vector<16x256xf32>
    %cst_31 = arith.constant 3.000000e+00 : f32
    %55 = vector.broadcast %cst_31 : f32 to vector<16x256xf32>
    %56 = arith.addf %54, %55 : vector<16x256xf32>
    %cst_32 = arith.constant 0.000000e+00 : f32
    %cst_33 = arith.constant 6.000000e+00 : f32
    %57 = vector.broadcast %cst_32 : f32 to vector<16x256xf32>
    %58 = arith.maximumf %57, %56 : vector<16x256xf32>
    %59 = vector.broadcast %cst_33 : f32 to vector<16x256xf32>
    %60 = arith.minimumf %59, %58 : vector<16x256xf32>
    %cst_34 = arith.constant 0.166666672 : f32
    %61 = vector.broadcast %cst_34 : f32 to vector<16x256xf32>
    %62 = arith.mulf %60, %61 : vector<16x256xf32>
    %63 = arith.mulf %54, %62 : vector<16x256xf32>
    %c17_i32_35 = arith.constant 17 : i32
    %64 = tpu.dynamic_rotate %63 by %c17_i32_35 dim 1 : vector<16x256xf32>, i32 -> vector<16x256xf32>
    %c0_36 = arith.constant 0 : index
    %c0_37 = arith.constant 0 : index
    %c0_38 = arith.constant 0 : index
    %65 = vector.load %arg6[%c0_36, %c0_37, %c0_38] : memref<9x16x256xf32, #tpu.memory_space<vmem>>, vector<1x16x256xf32>
    %66 = vector.shape_cast %65 : vector<1x16x256xf32> to vector<16x256xf32>
    %67 = arith.mulf %64, %66 : vector<16x256xf32>
    %c16_i32_39 = arith.constant 16 : i32
    %68 = tpu.dynamic_rotate %63 by %c16_i32_39 dim 1 : vector<16x256xf32>, i32 -> vector<16x256xf32>
    %c1_40 = arith.constant 1 : index
    %c0_41 = arith.constant 0 : index
    %c0_42 = arith.constant 0 : index
    %69 = vector.load %arg6[%c1_40, %c0_41, %c0_42] : memref<9x16x256xf32, #tpu.memory_space<vmem>>, vector<1x16x256xf32>
    %70 = vector.shape_cast %69 : vector<1x16x256xf32> to vector<16x256xf32>
    %71 = arith.mulf %68, %70 : vector<16x256xf32>
    %72 = arith.addf %67, %71 : vector<16x256xf32>
    %c15_i32_43 = arith.constant 15 : i32
    %73 = tpu.dynamic_rotate %63 by %c15_i32_43 dim 1 : vector<16x256xf32>, i32 -> vector<16x256xf32>
    %c2_44 = arith.constant 2 : index
    %c0_45 = arith.constant 0 : index
    %c0_46 = arith.constant 0 : index
    %74 = vector.load %arg6[%c2_44, %c0_45, %c0_46] : memref<9x16x256xf32, #tpu.memory_space<vmem>>, vector<1x16x256xf32>
    %75 = vector.shape_cast %74 : vector<1x16x256xf32> to vector<16x256xf32>
    %76 = arith.mulf %73, %75 : vector<16x256xf32>
    %77 = arith.addf %72, %76 : vector<16x256xf32>
    %c1_i32_47 = arith.constant 1 : i32
    %78 = tpu.dynamic_rotate %63 by %c1_i32_47 dim 1 : vector<16x256xf32>, i32 -> vector<16x256xf32>
    %c3_48 = arith.constant 3 : index
    %c0_49 = arith.constant 0 : index
    %c0_50 = arith.constant 0 : index
    %79 = vector.load %arg6[%c3_48, %c0_49, %c0_50] : memref<9x16x256xf32, #tpu.memory_space<vmem>>, vector<1x16x256xf32>
    %80 = vector.shape_cast %79 : vector<1x16x256xf32> to vector<16x256xf32>
    %81 = arith.mulf %78, %80 : vector<16x256xf32>
    %82 = arith.addf %77, %81 : vector<16x256xf32>
    %c4_51 = arith.constant 4 : index
    %c0_52 = arith.constant 0 : index
    %c0_53 = arith.constant 0 : index
    %83 = vector.load %arg6[%c4_51, %c0_52, %c0_53] : memref<9x16x256xf32, #tpu.memory_space<vmem>>, vector<1x16x256xf32>
    %84 = vector.shape_cast %83 : vector<1x16x256xf32> to vector<16x256xf32>
    %85 = arith.mulf %63, %84 : vector<16x256xf32>
    %86 = arith.addf %82, %85 : vector<16x256xf32>
    %c255_i32_54 = arith.constant 255 : i32
    %87 = tpu.dynamic_rotate %63 by %c255_i32_54 dim 1 : vector<16x256xf32>, i32 -> vector<16x256xf32>
    %c5_55 = arith.constant 5 : index
    %c0_56 = arith.constant 0 : index
    %c0_57 = arith.constant 0 : index
    %88 = vector.load %arg6[%c5_55, %c0_56, %c0_57] : memref<9x16x256xf32, #tpu.memory_space<vmem>>, vector<1x16x256xf32>
    %89 = vector.shape_cast %88 : vector<1x16x256xf32> to vector<16x256xf32>
    %90 = arith.mulf %87, %89 : vector<16x256xf32>
    %91 = arith.addf %86, %90 : vector<16x256xf32>
    %c241_i32_58 = arith.constant 241 : i32
    %92 = tpu.dynamic_rotate %63 by %c241_i32_58 dim 1 : vector<16x256xf32>, i32 -> vector<16x256xf32>
    %c6_59 = arith.constant 6 : index
    %c0_60 = arith.constant 0 : index
    %c0_61 = arith.constant 0 : index
    %93 = vector.load %arg6[%c6_59, %c0_60, %c0_61] : memref<9x16x256xf32, #tpu.memory_space<vmem>>, vector<1x16x256xf32>
    %94 = vector.shape_cast %93 : vector<1x16x256xf32> to vector<16x256xf32>
    %95 = arith.mulf %92, %94 : vector<16x256xf32>
    %96 = arith.addf %91, %95 : vector<16x256xf32>
    %c240_i32_62 = arith.constant 240 : i32
    %97 = tpu.dynamic_rotate %63 by %c240_i32_62 dim 1 : vector<16x256xf32>, i32 -> vector<16x256xf32>
    %c7_63 = arith.constant 7 : index
    %c0_64 = arith.constant 0 : index
    %c0_65 = arith.constant 0 : index
    %98 = vector.load %arg6[%c7_63, %c0_64, %c0_65] : memref<9x16x256xf32, #tpu.memory_space<vmem>>, vector<1x16x256xf32>
    %99 = vector.shape_cast %98 : vector<1x16x256xf32> to vector<16x256xf32>
    %100 = arith.mulf %97, %99 : vector<16x256xf32>
    %101 = arith.addf %96, %100 : vector<16x256xf32>
    %c239_i32_66 = arith.constant 239 : i32
    %102 = tpu.dynamic_rotate %63 by %c239_i32_66 dim 1 : vector<16x256xf32>, i32 -> vector<16x256xf32>
    %c8_67 = arith.constant 8 : index
    %c0_68 = arith.constant 0 : index
    %c0_69 = arith.constant 0 : index
    %103 = vector.load %arg6[%c8_67, %c0_68, %c0_69] : memref<9x16x256xf32, #tpu.memory_space<vmem>>, vector<1x16x256xf32>
    %104 = vector.shape_cast %103 : vector<1x16x256xf32> to vector<16x256xf32>
    %105 = arith.mulf %102, %104 : vector<16x256xf32>
    %106 = arith.addf %101, %105 : vector<16x256xf32>
    %c0_70 = arith.constant 0 : index
    %c0_71 = arith.constant 0 : index
    %107 = vector.load %arg7[%c0_70, %c0_71] : memref<16x16xf32, #tpu.memory_space<vmem>>, vector<16x16xf32>
    %cst_72 = arith.constant dense<0.000000e+00> : vector<16x256xf32>
    %108 = tpu.matmul %107, %106, %cst_72 {dimension_numbers = #tpu.dot_dimension_numbers<[1], [0], [0], [1], [0, 0, 1, 1], [], []>} : vector<16x16xf32>, vector<16x256xf32>, vector<16x256xf32> -> vector<16x256xf32>
    %c0_73 = arith.constant 0 : index
    %c0_74 = arith.constant 0 : index
    %109 = vector.load %arg8[%c0_73, %c0_74] : memref<16x1xf32, #tpu.memory_space<vmem>>, vector<16x1xf32>
    %110 = vector.broadcast %109 : vector<16x1xf32> to vector<16x256xf32>
    %111 = arith.addf %108, %110 : vector<16x256xf32>
    %cst_75 = arith.constant 3.000000e+00 : f32
    %112 = vector.broadcast %cst_75 : f32 to vector<16x256xf32>
    %113 = arith.addf %111, %112 : vector<16x256xf32>
    %cst_76 = arith.constant 0.000000e+00 : f32
    %cst_77 = arith.constant 6.000000e+00 : f32
    %114 = vector.broadcast %cst_76 : f32 to vector<16x256xf32>
    %115 = arith.maximumf %114, %113 : vector<16x256xf32>
    %116 = vector.broadcast %cst_77 : f32 to vector<16x256xf32>
    %117 = arith.minimumf %116, %115 : vector<16x256xf32>
    %cst_78 = arith.constant 0.166666672 : f32
    %118 = vector.broadcast %cst_78 : f32 to vector<16x256xf32>
    %119 = arith.mulf %117, %118 : vector<16x256xf32>
    %120 = arith.mulf %111, %119 : vector<16x256xf32>
    %c17_i32_79 = arith.constant 17 : i32
    %121 = tpu.dynamic_rotate %120 by %c17_i32_79 dim 1 : vector<16x256xf32>, i32 -> vector<16x256xf32>
    %c0_80 = arith.constant 0 : index
    %c0_81 = arith.constant 0 : index
    %c0_82 = arith.constant 0 : index
    %122 = vector.load %arg9[%c0_80, %c0_81, %c0_82] : memref<9x16x256xf32, #tpu.memory_space<vmem>>, vector<1x16x256xf32>
    %123 = vector.shape_cast %122 : vector<1x16x256xf32> to vector<16x256xf32>
    %124 = arith.mulf %121, %123 : vector<16x256xf32>
    %c16_i32_83 = arith.constant 16 : i32
    %125 = tpu.dynamic_rotate %120 by %c16_i32_83 dim 1 : vector<16x256xf32>, i32 -> vector<16x256xf32>
    %c1_84 = arith.constant 1 : index
    %c0_85 = arith.constant 0 : index
    %c0_86 = arith.constant 0 : index
    %126 = vector.load %arg9[%c1_84, %c0_85, %c0_86] : memref<9x16x256xf32, #tpu.memory_space<vmem>>, vector<1x16x256xf32>
    %127 = vector.shape_cast %126 : vector<1x16x256xf32> to vector<16x256xf32>
    %128 = arith.mulf %125, %127 : vector<16x256xf32>
    %129 = arith.addf %124, %128 : vector<16x256xf32>
    %c15_i32_87 = arith.constant 15 : i32
    %130 = tpu.dynamic_rotate %120 by %c15_i32_87 dim 1 : vector<16x256xf32>, i32 -> vector<16x256xf32>
    %c2_88 = arith.constant 2 : index
    %c0_89 = arith.constant 0 : index
    %c0_90 = arith.constant 0 : index
    %131 = vector.load %arg9[%c2_88, %c0_89, %c0_90] : memref<9x16x256xf32, #tpu.memory_space<vmem>>, vector<1x16x256xf32>
    %132 = vector.shape_cast %131 : vector<1x16x256xf32> to vector<16x256xf32>
    %133 = arith.mulf %130, %132 : vector<16x256xf32>
    %134 = arith.addf %129, %133 : vector<16x256xf32>
    %c1_i32_91 = arith.constant 1 : i32
    %135 = tpu.dynamic_rotate %120 by %c1_i32_91 dim 1 : vector<16x256xf32>, i32 -> vector<16x256xf32>
    %c3_92 = arith.constant 3 : index
    %c0_93 = arith.constant 0 : index
    %c0_94 = arith.constant 0 : index
    %136 = vector.load %arg9[%c3_92, %c0_93, %c0_94] : memref<9x16x256xf32, #tpu.memory_space<vmem>>, vector<1x16x256xf32>
    %137 = vector.shape_cast %136 : vector<1x16x256xf32> to vector<16x256xf32>
    %138 = arith.mulf %135, %137 : vector<16x256xf32>
    %139 = arith.addf %134, %138 : vector<16x256xf32>
    %c4_95 = arith.constant 4 : index
    %c0_96 = arith.constant 0 : index
    %c0_97 = arith.constant 0 : index
    %140 = vector.load %arg9[%c4_95, %c0_96, %c0_97] : memref<9x16x256xf32, #tpu.memory_space<vmem>>, vector<1x16x256xf32>
    %141 = vector.shape_cast %140 : vector<1x16x256xf32> to vector<16x256xf32>
    %142 = arith.mulf %120, %141 : vector<16x256xf32>
    %143 = arith.addf %139, %142 : vector<16x256xf32>
    %c255_i32_98 = arith.constant 255 : i32
    %144 = tpu.dynamic_rotate %120 by %c255_i32_98 dim 1 : vector<16x256xf32>, i32 -> vector<16x256xf32>
    %c5_99 = arith.constant 5 : index
    %c0_100 = arith.constant 0 : index
    %c0_101 = arith.constant 0 : index
    %145 = vector.load %arg9[%c5_99, %c0_100, %c0_101] : memref<9x16x256xf32, #tpu.memory_space<vmem>>, vector<1x16x256xf32>
    %146 = vector.shape_cast %145 : vector<1x16x256xf32> to vector<16x256xf32>
    %147 = arith.mulf %144, %146 : vector<16x256xf32>
    %148 = arith.addf %143, %147 : vector<16x256xf32>
    %c241_i32_102 = arith.constant 241 : i32
    %149 = tpu.dynamic_rotate %120 by %c241_i32_102 dim 1 : vector<16x256xf32>, i32 -> vector<16x256xf32>
    %c6_103 = arith.constant 6 : index
    %c0_104 = arith.constant 0 : index
    %c0_105 = arith.constant 0 : index
    %150 = vector.load %arg9[%c6_103, %c0_104, %c0_105] : memref<9x16x256xf32, #tpu.memory_space<vmem>>, vector<1x16x256xf32>
    %151 = vector.shape_cast %150 : vector<1x16x256xf32> to vector<16x256xf32>
    %152 = arith.mulf %149, %151 : vector<16x256xf32>
    %153 = arith.addf %148, %152 : vector<16x256xf32>
    %c240_i32_106 = arith.constant 240 : i32
    %154 = tpu.dynamic_rotate %120 by %c240_i32_106 dim 1 : vector<16x256xf32>, i32 -> vector<16x256xf32>
    %c7_107 = arith.constant 7 : index
    %c0_108 = arith.constant 0 : index
    %c0_109 = arith.constant 0 : index
    %155 = vector.load %arg9[%c7_107, %c0_108, %c0_109] : memref<9x16x256xf32, #tpu.memory_space<vmem>>, vector<1x16x256xf32>
    %156 = vector.shape_cast %155 : vector<1x16x256xf32> to vector<16x256xf32>
    %157 = arith.mulf %154, %156 : vector<16x256xf32>
    %158 = arith.addf %153, %157 : vector<16x256xf32>
    %c239_i32_110 = arith.constant 239 : i32
    %159 = tpu.dynamic_rotate %120 by %c239_i32_110 dim 1 : vector<16x256xf32>, i32 -> vector<16x256xf32>
    %c8_111 = arith.constant 8 : index
    %c0_112 = arith.constant 0 : index
    %c0_113 = arith.constant 0 : index
    %160 = vector.load %arg9[%c8_111, %c0_112, %c0_113] : memref<9x16x256xf32, #tpu.memory_space<vmem>>, vector<1x16x256xf32>
    %161 = vector.shape_cast %160 : vector<1x16x256xf32> to vector<16x256xf32>
    %162 = arith.mulf %159, %161 : vector<16x256xf32>
    %163 = arith.addf %158, %162 : vector<16x256xf32>
    %c0_114 = arith.constant 0 : index
    %c0_115 = arith.constant 0 : index
    %164 = vector.load %arg10[%c0_114, %c0_115] : memref<16x16xf32, #tpu.memory_space<vmem>>, vector<16x16xf32>
    %cst_116 = arith.constant dense<0.000000e+00> : vector<16x256xf32>
    %165 = tpu.matmul %164, %163, %cst_116 {dimension_numbers = #tpu.dot_dimension_numbers<[1], [0], [0], [1], [0, 0, 1, 1], [], []>} : vector<16x16xf32>, vector<16x256xf32>, vector<16x256xf32> -> vector<16x256xf32>
    %cst_117 = arith.constant dense<0.000000e+00> : vector<16xf32>
    %166 = vector.multi_reduction <add>, %165, %cst_117 [1] : vector<16x256xf32> to vector<16xf32>
    %167 = vector.shape_cast %166 : vector<16xf32> to vector<16x1xf32>
    %cst_118 = arith.constant 3.906250e-03 : f32
    %168 = vector.broadcast %cst_118 : f32 to vector<16x1xf32>
    %169 = arith.mulf %167, %168 : vector<16x1xf32>
    %170 = vector.broadcast %169 : vector<16x1xf32> to vector<16x256xf32>
    %171 = arith.subf %165, %170 : vector<16x256xf32>
    %172 = arith.mulf %171, %171 : vector<16x256xf32>
    %cst_119 = arith.constant dense<0.000000e+00> : vector<16xf32>
    %173 = vector.multi_reduction <add>, %172, %cst_119 [1] : vector<16x256xf32> to vector<16xf32>
    %174 = vector.shape_cast %173 : vector<16xf32> to vector<16x1xf32>
    %cst_120 = arith.constant 3.906250e-03 : f32
    %175 = vector.broadcast %cst_120 : f32 to vector<16x1xf32>
    %176 = arith.mulf %174, %175 : vector<16x1xf32>
    %cst_121 = arith.constant 9.99999974E-6 : f32
    %177 = vector.broadcast %cst_121 : f32 to vector<16x1xf32>
    %178 = arith.addf %176, %177 : vector<16x1xf32>
    %179 = math.rsqrt %178 : vector<16x1xf32>
    %180 = vector.broadcast %179 : vector<16x1xf32> to vector<16x256xf32>
    %181 = arith.mulf %171, %180 : vector<16x256xf32>
    %cst_122 = arith.constant 3.000000e+00 : f32
    %182 = vector.broadcast %cst_122 : f32 to vector<16x256xf32>
    %183 = arith.addf %181, %182 : vector<16x256xf32>
    %cst_123 = arith.constant 0.000000e+00 : f32
    %cst_124 = arith.constant 6.000000e+00 : f32
    %184 = vector.broadcast %cst_123 : f32 to vector<16x256xf32>
    %185 = arith.maximumf %184, %183 : vector<16x256xf32>
    %186 = vector.broadcast %cst_124 : f32 to vector<16x256xf32>
    %187 = arith.minimumf %186, %185 : vector<16x256xf32>
    %cst_125 = arith.constant 0.166666672 : f32
    %188 = vector.broadcast %cst_125 : f32 to vector<16x256xf32>
    %189 = arith.mulf %187, %188 : vector<16x256xf32>
    %190 = arith.mulf %181, %189 : vector<16x256xf32>
    %cst_126 = arith.constant dense<0.000000e+00> : vector<16xf32>
    %191 = vector.multi_reduction <add>, %190, %cst_126 [1] : vector<16x256xf32> to vector<16xf32>
    %192 = vector.shape_cast %191 : vector<16xf32> to vector<16x1xf32>
    %cst_127 = arith.constant 3.906250e-03 : f32
    %193 = vector.broadcast %cst_127 : f32 to vector<16x1xf32>
    %194 = arith.mulf %192, %193 : vector<16x1xf32>
    %195 = vector.shape_cast %194 : vector<16x1xf32> to vector<16x1xf32>
    %196 = vector.broadcast %195 : vector<16x1xf32> to vector<16x256xf32>
    %c0_128 = arith.constant 0 : index
    %c0_129 = arith.constant 0 : index
    %197 = vector.load %arg11[%c0_128, %c0_129] : memref<4x16xf32, #tpu.memory_space<vmem>>, vector<4x16xf32>
    %cst_130 = arith.constant dense<0.000000e+00> : vector<4x256xf32>
    %198 = tpu.matmul %197, %196, %cst_130 {dimension_numbers = #tpu.dot_dimension_numbers<[1], [0], [0], [1], [0, 0, 1, 1], [], []>} : vector<4x16xf32>, vector<16x256xf32>, vector<4x256xf32> -> vector<4x256xf32>
    %c0_131 = arith.constant 0 : index
    %c0_132 = arith.constant 0 : index
    %199 = vector.load %arg12[%c0_131, %c0_132] : memref<4x1xf32, #tpu.memory_space<vmem>>, vector<4x1xf32>
    %200 = vector.broadcast %199 : vector<4x1xf32> to vector<4x256xf32>
    %201 = arith.addf %198, %200 : vector<4x256xf32>
    %cst_133 = arith.constant 0.000000e+00 : f32
    %202 = vector.broadcast %cst_133 : f32 to vector<4x256xf32>
    %203 = arith.maximumf %201, %202 : vector<4x256xf32>
    %c0_134 = arith.constant 0 : index
    %c0_135 = arith.constant 0 : index
    %204 = vector.load %arg13[%c0_134, %c0_135] : memref<16x4xf32, #tpu.memory_space<vmem>>, vector<16x4xf32>
    %cst_136 = arith.constant dense<0.000000e+00> : vector<16x256xf32>
    %205 = tpu.matmul %204, %203, %cst_136 {dimension_numbers = #tpu.dot_dimension_numbers<[1], [0], [0], [1], [0, 0, 1, 1], [], []>} : vector<16x4xf32>, vector<4x256xf32>, vector<16x256xf32> -> vector<16x256xf32>
    %cst_137 = arith.constant 3.000000e+00 : f32
    %206 = vector.broadcast %cst_137 : f32 to vector<16x256xf32>
    %207 = arith.addf %205, %206 : vector<16x256xf32>
    %cst_138 = arith.constant 0.000000e+00 : f32
    %cst_139 = arith.constant 6.000000e+00 : f32
    %208 = vector.broadcast %cst_138 : f32 to vector<16x256xf32>
    %209 = arith.maximumf %208, %207 : vector<16x256xf32>
    %210 = vector.broadcast %cst_139 : f32 to vector<16x256xf32>
    %211 = arith.minimumf %210, %209 : vector<16x256xf32>
    %cst_140 = arith.constant 0.166666672 : f32
    %212 = vector.broadcast %cst_140 : f32 to vector<16x256xf32>
    %213 = arith.mulf %211, %212 : vector<16x256xf32>
    %214 = arith.mulf %190, %213 : vector<16x256xf32>
    %c0_141 = arith.constant 0 : index
    %c16 = arith.constant 16 : index
    %c0_142 = arith.constant 0 : index
    %215 = vector.load %arg14[%c0_141, %c16, %c0_142] : memref<1x32x256xf32, #tpu.memory_space<vmem>>, vector<1x16x256xf32>
    %216 = vector.shape_cast %215 : vector<1x16x256xf32> to vector<16x256xf32>
    %217 = vector.shape_cast %214 : vector<16x256xf32> to vector<1x16x256xf32>
    tpu.vector_store %arg14[%c0_141, %c16, %c0_142], %217 {strides = array<i32>} : memref<1x32x256xf32, #tpu.memory_space<vmem>>, vector<1x16x256xf32>,
    return
  }
  func.func @transform_0(%arg0: i32) -> (i32, i32, i32) {
    %c0_i32 = arith.constant 0 : i32
    %c0_i32_0 = arith.constant 0 : i32
    %c0_i32_1 = arith.constant 0 : i32
    return %arg0, %c0_i32, %c0_i32_0 : i32, i32, i32
  }
  func.func @transform_1(%arg0: i32) -> (i32, i32) {
    %c0_i32 = arith.constant 0 : i32
    %c0_i32_0 = arith.constant 0 : i32
    %c0_i32_1 = arith.constant 0 : i32
    return %c0_i32, %c0_i32_0 : i32, i32
  }
  func.func @transform_2(%arg0: i32) -> (i32, i32, i32) {
    %c0_i32 = arith.constant 0 : i32
    %c0_i32_0 = arith.constant 0 : i32
    %c0_i32_1 = arith.constant 0 : i32
    %c0_i32_2 = arith.constant 0 : i32
    return %c0_i32, %c0_i32_0, %c0_i32_1 : i32, i32, i32
  }
  func.func @transform_3(%arg0: i32) -> (i32, i32) {
    %c0_i32 = arith.constant 0 : i32
    %c0_i32_0 = arith.constant 0 : i32
    %c0_i32_1 = arith.constant 0 : i32
    return %c0_i32, %c0_i32_0 : i32, i32
  }
  func.func @transform_4(%arg0: i32) -> (i32, i32) {
    %c0_i32 = arith.constant 0 : i32
    %c0_i32_0 = arith.constant 0 : i32
    %c0_i32_1 = arith.constant 0 : i32
    return %c0_i32, %c0_i32_0 : i32, i32
  }
  func.func @transform_5(%arg0: i32) -> (i32, i32, i32) {
    %c0_i32 = arith.constant 0 : i32
    %c0_i32_0 = arith.constant 0 : i32
    %c0_i32_1 = arith.constant 0 : i32
    %c0_i32_2 = arith.constant 0 : i32
    return %c0_i32, %c0_i32_0, %c0_i32_1 : i32, i32, i32
  }
  func.func @transform_6(%arg0: i32) -> (i32, i32) {
    %c0_i32 = arith.constant 0 : i32
    %c0_i32_0 = arith.constant 0 : i32
    %c0_i32_1 = arith.constant 0 : i32
    return %c0_i32, %c0_i32_0 : i32, i32
  }
  func.func @transform_7(%arg0: i32) -> (i32, i32) {
    %c0_i32 = arith.constant 0 : i32
    %c0_i32_0 = arith.constant 0 : i32
    %c0_i32_1 = arith.constant 0 : i32
    return %c0_i32, %c0_i32_0 : i32, i32
  }
  func.func @transform_8(%arg0: i32) -> (i32, i32, i32) {
    %c0_i32 = arith.constant 0 : i32
    %c0_i32_0 = arith.constant 0 : i32
    %c0_i32_1 = arith.constant 0 : i32
    %c0_i32_2 = arith.constant 0 : i32
    return %c0_i32, %c0_i32_0, %c0_i32_1 : i32, i32, i32
  }
  func.func @transform_9(%arg0: i32) -> (i32, i32) {
    %c0_i32 = arith.constant 0 : i32
    %c0_i32_0 = arith.constant 0 : i32
    %c0_i32_1 = arith.constant 0 : i32
    return %c0_i32, %c0_i32_0 : i32, i32
  }
  func.func @transform_10(%arg0: i32) -> (i32, i32) {
    %c0_i32 = arith.constant 0 : i32
    %c0_i32_0 = arith.constant 0 : i32
    %c0_i32_1 = arith.constant 0 : i32
    return %c0_i32, %c0_i32_0 : i32, i32
  }
  func.func @transform_11(%arg0: i32) -> (i32, i32) {
    %c0_i32 = arith.constant 0 : i32
    %c0_i32_0 = arith.constant 0 : i32
    %c0_i32_1 = arith.constant 0 : i32
    return %c0_i32, %c0_i32_0 : i32, i32
  }
  func.func @transform_12(%arg0: i32) -> (i32, i32) {
    %c0_i32 = arith.constant 0 : i32
    %c0_i32_0 = arith.constant 0 : i32
    %c0_i32_1 = arith.constant 0 : i32
    return %c0_i32, %c0_i32_0 : i32, i32
  }
  func.func @transform_13(%arg0: i32) -> (i32, i32, i32) {
    %c0_i32 = arith.constant 0 : i32
    %c0_i32_0 = arith.constant 0 : i32
    %c0_i32_1 = arith.constant 0 : i32
    return %arg0, %c0_i32, %c0_i32_0 : i32, i32, i32
  }
}

</mosaic_0001>

<bundles_post_ra>
// kernel: ibn_shuffle_xception_forward.1
= control target key start
LH: loop header
LB: loop body
LE: loop exit
PB: predicated region body
PF: predicated region fallthrough
CT: control target
= control target key end

     0   :  { %18 = vsyncpa [#allocation3], 0  ;;  %s3639_s0 = inlined_call_operand.vmem [shape: f32[2,32,256], index: 0, kind: input, shape index: {}]   ;;  %s3640_s1 = inlined_call_operand.vmem [shape: f32[16,32], index: 1, kind: input, shape index: {}]   ;;  %s3641_s2 = inlined_call_operand.vmem [shape: f32[9,32,256], index: 2, kind: input, shape index: {}]   ;;  %s3642_s3 = inlined_call_operand.vmem [shape: f32[16,32], index: 3, kind: input, shape index: {}]   ;;  %s3643_s4 = inlined_call_operand.vmem [shape: f32[16,1], index: 4, kind: input, shape index: {}]   ;;  %s3644_s5 = inlined_call_operand.hbm [shape: f32[9,16,256], index: 5, kind: input, shape index: {}]   ;;  %s3645_s6 = inlined_call_operand.vmem [shape: f32[16,16], index: 6, kind: input, shape index: {}]   ;;  %s3646_s7 = inlined_call_operand.vmem [shape: f32[16,1], index: 7, kind: input, shape index: {}]   ;;  %s3647_s8 = inlined_call_operand.hbm [shape: f32[9,16,256], index: 8, kind: input, shape index: {}]   ;;  %s3648_s9 = inlined_call_operand.vmem [shape: f32[16,16], index: 9, kind: input, shape index: {}]   ;;  %s3649_s10 = inlined_call_operand.vmem [shape: f32[4,16], index: 10, kind: input, shape index: {}]   ;;  %s3650_s11 = inlined_call_operand.vmem [shape: f32[4,1], index: 11, kind: input, shape index: {}]   ;;  %s3651_s12 = inlined_call_operand.vmem [shape: f32[16,4], index: 12, kind: input, shape index: {}]   ;;  %s3652_s13 = inlined_call_operand.vmem [shape: f32[2,32,256], index: 13, kind: output, shape index: {}]  }
   0x1   :  { %19 = vsyncpa [#allocation5], 0  ;;  %s2381_s25 = smov 0  }
   0x2 LB: > { %s2387_s26 = sadd.s32 4294967295, %s2295_s25   ;;  %p2058_p0 = scmp.ge.s32.totalorder %s2295_s25, 1  ;;  %s2295_s25 = sphi %s2381_s25, %s25_s25  }
   0x3   : > { %p334_p1 = scmp.lt.s32.totalorder %s2295_s25, 3  ;;  %s2297_s27 = smov [#allocation2]  }
   0x4   : > { %s358_s28 = sshll.u32 %s2297_s27, 4  ;;  %p3653_p3 = scmp.eq.s32.totalorder %s2387_s26, 0  ;;  %s359_s28 = int_to_ptr.vmem [resolvable:$true] %s358_s28 }
   0x5   : > { %p2391_p2 = pnand %p2058_p0, %p334_p1  ;;  %s2298_s30 = smov [#allocation4]  }
   0x6   : > { %s377_s14 = sshll.u32 %s2298_s30, 4  ;;  %s2225_s18 = scalar_lea.hbm %s3644_s5, 4608  ;;  %s2404_s14 = int_to_ptr.vmem [resolvable:$true] %s377_s14 }
   0x7   : > { %s3677_s29 = scalar_select %p2391_p2, 1, 0 }
   0x8   : > { %p2186_p4 = pneg %p2391_p2  ;;  %p2226_p6 = scmp.ne.s32.totalorder %s3644_s5, %s2225_s18 }
   0x9   : > { %p2232_p10 = scmp.lt.u32.totalorder %s2225_s18, %s3644_s5 }
   0xa   : > { %p2400_p5 = pnand %p3653_p3, %p2186_p4 }
   0xc   : > { %p2227_p7 = pneg %p2400_p5 }
   0xe   : > { %p2228_p8 = pnand %p2227_p7, %p2226_p6 }
  0x10   : > { %p2229_p9 = pneg %p2228_p8 }
  0x12   : > { %p2234_p11 = pnand %p2232_p10, %p2229_p9 }
  0x14   : > { %2237 = shalt.err (!%p2234_p11)
}
  0x15   : > { %s2238_s23 = scalar_lea.vmem %s359_s28, 4608  ;;  %p2246_p1 = scmp.lt.s32.totalorder %s359_s28, %s359_s28 }
  0x16   : > { %p2239_p12 = scmp.ne.s32.totalorder %s359_s28, %s2238_s23  ;;  %p2247_p4 = scmp.lt.s32.totalorder %s2238_s23, %s2238_s23 }
  0x18   : > { %p2241_p13 = pnand %p2239_p12, %p2227_p7  ;;  %p2248_p3 = por %p2247_p4, %p2246_p1 }
  0x1a   : > { %p2242_p0 = pneg %p2241_p13 }
  0x1c   : > { %p2249_p2 = pnand %p2248_p3, %p2242_p0 }
  0x1e   : > { %2252 = shalt.err (!%p2249_p2)
}
  0x1f   : > { %s2299_s24 = smov 256   ;;  %s2300_s27 = smov 16  }
  0x20   : > { %2189 = dma.hbm_to_vmem [thread:$0]  (!%p2400_p5), %s3644_s5, 4608, %s359_s28, [#allocation3], %s2299_s24, %s2299_s24, %s2300_s27  }
  0x21   : > { %s2253_s19 = scalar_lea.hbm %s3647_s8, 4608 }
  0x22   : > { %p2254_p6 = scmp.ne.s32.totalorder %s3647_s8, %s2253_s19  ;;  %p2260_p8 = scmp.lt.u32.totalorder %s2253_s19, %s3647_s8 }
  0x24   : > { %p2256_p2 = pnand %p2254_p6, %p2227_p7 }
  0x26   : > { %p2257_p3 = pneg %p2256_p2 }
  0x28   : > { %p2262_p9 = pnand %p2260_p8, %p2257_p3 }
  0x2a   : > { %2265 = shalt.err (!%p2262_p9)
}
  0x2b   : > { %s2266_s28 = scalar_lea.vmem %s2404_s14, 4608  ;;  %p2274_p13 = scmp.lt.s32.totalorder %s2404_s14, %s2404_s14 }
  0x2c   : > { %p2267_p10 = scmp.ne.s32.totalorder %s2404_s14, %s2266_s28  ;;  %p2275_p0 = scmp.lt.s32.totalorder %s2266_s28, %s2266_s28 }
  0x2e   : > { %p2269_p11 = pnand %p2267_p10, %p2227_p7  ;;  %p2276_p1 = por %p2275_p0, %p2274_p13 }
  0x30   : > { %p2270_p12 = pneg %p2269_p11 }
  0x32   : > { %p2277_p4 = pnand %p2276_p1, %p2270_p12 }
  0x34   : > { %2280 = shalt.err (!%p2277_p4)
}
  0x35   : > { %2192 = dma.hbm_to_vmem [thread:$0]  (!%p2400_p5), %s3647_s8, 4608, %s2404_s14, [#allocation5], %s2299_s24, %s2299_s24, %s2300_s27  }
  0x36   : > { %p3679_p6 = scmp.ne.s32.totalorder %s3677_s29, 0 }
  0x38   : > { %413 = sbr.rel (%p3679_p6) target bundleno = 2290 (0x8f2), region = 72 }
  0x3f   : > { %p3680_p2 = scmp.eq.s32.totalorder %s2387_s26, 0 }
  0x41   : > { %2286 = dma.done.wait (%p3680_p2), [#allocation3], 4608   ;;  %p3681_p7 = pmov %p3680_p2 }
  0x42   : > { %p3682_p3 = pmov %p3680_p2 }
  0x43   : > { %2288 = vsyncadd (%p3681_p7), [#allocation3], 4294962688 }
  0x44   : > { %2290 = dma.done.wait (%p3682_p3), [#allocation5], 4608   ;;  %p3683_p8 = pmov %p3680_p2 }
  0x45   : > { %p461_p9 = scmp.lt.s32.totalorder %s2387_s26, 1  ;;  %s2301_s27 = smov 17   ;;  %v3658_v12 = vmov 0.0   ;;  %v989_v17 = vld [vmem:[%s3643_s4] sm:$0xff]  ;;  %v2310_v18 = vmov 0   ;;  %v990_v19 = vld [vmem:[%s3643_s4 + $0x8] sm:$0xff]  ;;  %v585_v46 = vlaneseq }
  0x46   : > { %2292 = vsyncadd (%p3683_p8), [#allocation5], 4294962688  ;;  %s2302_s17 = smov 16   ;;  %s2303_s18 = smov 15   ;;  %1071 = vmatprep.mubr.f32.mxu1 %v3658_v12  ;;  %552 = vmatprep.mubr.f32.mxu0 %v3658_v12  ;;  %v2097_v50 = vld [vmem:[%s3641_s2 + $0x110] sm:$0xff]  ;;  %v2098_v51 = vld [vmem:[%s3641_s2 + $0x118] sm:$0xff] }
  0x47   : > { %s3725_s26 = smov (!%p461_p9, %s2387_s26), 1  ;;  %s2304_s19 = smov 1   ;;  %2219 = vset.pattern.permute.xlu0 %v2310_v18  ;;  %2220 = vset.pattern.permute.xlu1 %v2310_v18  ;;  %v2689_v49 = vand.u32 127, %v585_v46  ;;  %v596_v54 = vld [vmem:[%s3641_s2] sm:$0xff]  ;;  %v2073_v55 = vld [vmem:[%s3641_s2 + $0x50] sm:$0xff]  ;;  %v2096_v59 = vld [vmem:[%s3641_s2 + $0x108] sm:$0xff] }
  0x48   : > { %s3655_s29 = sshll.u32 %s3725_s26, 6  ;;  %s2305_s20 = smov 127   ;;  %v2095_v58 = vld [vmem:[%s3641_s2 + $0x100] sm:$0xff]  ;;  %v2074_v60 = vld [vmem:[%s3641_s2 + $0x58] sm:$0xff]  ;;  %vm481_vm8 = vcmask 261120   ;;  %vm1326_vm9 = vcmask 130048  }
  0x49   : > { %s465_s24 = scalar_lea.vmem %s3639_s0, %s3655_s29  ;;  %s2306_s21 = smov 113   ;;  %vm628_vm0 = vcmp.lt.s32.totalorder %v2689_v49, 16  ;;  %vm587_vm1 = vcmp.lt.s32.totalorder %v2689_v49, 17  ;;  %vm678_vm2 = vcmp.lt.s32.totalorder %v2689_v49, 15  ;;  %vm728_vm3 = vcmp.lt.s32.totalorder %v2689_v49, 1  ;;  %v2071_v63 = vld [vmem:[%s3641_s2 + $0x40] sm:$0xff] }
  0x4a   : > { %v2473_v0 = vld [vmem:[%s465_s24 + $0x8] sm:$0xff]  ;;  %v2475_v1 = vld [vmem:[%s465_s24] sm:$0xff]  ;;  %v2481_v2 = vld [vmem:[%s465_s24 + $0x18] sm:$0xff]  ;;  %s3675_s22 = smov 112   ;;  %s3656_s23 = smov 111   ;;  %vm803_vm4 = vcmp.lt.s32.totalorder %v2689_v49, 127 }
  0x4b   : > { %3684 = vst [vmem:[#allocation8_spill] sm:$0xff] %v2473_v0  ;;  %3685 = vst [vmem:[#allocation9_spill] sm:$0xff] %v2475_v1  ;;  %577 = vrot.lane.b32.xlu1 %v2473_v0, %s2301_s27  ;;  %569 = vrot.lane.b32.xlu0 %v2475_v1, %s2301_s27  ;;  %v2483_v3 = vld [vmem:[%s465_s24 + $0x10] sm:$0xff]  ;;  %v2507_v5 = vld [vmem:[%s465_s24 + $0x20] sm:$0xff]  ;;  %v2715_v57 = vmul.f32 %v2098_v51, %v2481_v2  ;;  %vm853_vm5 = vcmp.lt.s32.totalorder %v2689_v49, 113  ;;  %vm903_vm6 = vcmp.lt.s32.totalorder %v2689_v49, 112 }
  0x4c   : > { %3686 = vst [vmem:[#allocation10_spill] sm:$0xff] %v2481_v2  ;;  %3687 = vst [vmem:[#allocation11_spill] sm:$0xff] %v2483_v3  ;;  %v2505_v4 = vld [vmem:[%s465_s24 + $0x30] sm:$0xff]  ;;  %v2513_v6 = vld [vmem:[%s465_s24 + $0x38] sm:$0xff]  ;;  %v2712_v56 = vmul.f32 %v2097_v50, %v2483_v3  ;;  %vm953_vm7 = vcmp.lt.s32.totalorder %v2689_v49, 111  ;;  %s3713_s29 = smov 111  }
  0x4d   : > { %3688 = vst [vmem:[#allocation12_spill] sm:$0xff] %v2505_v4  ;;  %3689 = vst [vmem:[#allocation13_spill] sm:$0xff] %v2507_v5  ;;  %v2515_v7 = vld [vmem:[%s465_s24 + $0x28] sm:$0xff]  ;;  %v598_v50 = vld [vmem:[%s3641_s2 + $0x10] sm:$0xff]  ;;  %s3722_s28 = sshll.u32 %s3725_s26, 6  ;;  %s3723_s26 = smov 112  }
  0x4e   : > { %3690 = vst [vmem:[#allocation14_spill] sm:$0xff] %v2513_v6  ;;  %3691 = vst [vmem:[#allocation15_spill] sm:$0xff] %v2515_v7  ;;  %v1639_v49 = vld [vmem:[%s3648_s9 + $0x8] sm:$0xff]  ;;  %vm1875_vm10 = vcmask 1043456   ;;  %vm1868_vm11 = vcmask 31744  }
  0x4f   : > { %579 = vrot.lane.b32.xlu1 %v2481_v2, %s2301_s27  ;;  %571 = vrot.lane.b32.xlu0 %v2483_v3, %s2301_s27 }
  0x53   : > { %614 = vrot.lane.b32.xlu1 %v2483_v3, %s2302_s17  ;;  %612 = vrot.lane.b32.xlu0 %v2475_v1, %s2302_s17 }
  0x57   : > { %622 = vrot.lane.b32.xlu1 %v2481_v2, %s2302_s17  ;;  %620 = vrot.lane.b32.xlu0 %v2473_v0, %s2302_s17 }
  0x5b   : > { %664 = vrot.lane.b32.xlu1 %v2483_v3, %s2303_s18  ;;  %662 = vrot.lane.b32.xlu0 %v2475_v1, %s2303_s18 }
  0x5f   : > { %672 = vrot.lane.b32.xlu1 %v2481_v2, %s2303_s18  ;;  %670 = vrot.lane.b32.xlu0 %v2473_v0, %s2303_s18 }
  0x63   : > { %575 = vrot.lane.b32.xlu1 %v2505_v4, %s2301_s27  ;;  %573 = vrot.lane.b32.xlu0 %v2507_v5, %s2301_s27 }
  0x67   : > { %583 = vrot.lane.b32.xlu1 %v2513_v6, %s2301_s27  ;;  %581 = vrot.lane.b32.xlu0 %v2515_v7, %s2301_s27 }
  0x6b   : > { %618 = vrot.lane.b32.xlu1 %v2505_v4, %s2302_s17  ;;  %616 = vrot.lane.b32.xlu0 %v2507_v5, %s2302_s17 }
  0x6f   : > { %626 = vrot.lane.b32.xlu1 %v2513_v6, %s2302_s17  ;;  %624 = vrot.lane.b32.xlu0 %v2515_v7, %s2302_s17 }
  0x73   : > { %714 = vrot.lane.b32.xlu1 %v2483_v3, %s2304_s19  ;;  %712 = vrot.lane.b32.xlu0 %v2475_v1, %s2304_s19 }
  0x77   : > { %722 = vrot.lane.b32.xlu1 %v2481_v2, %s2304_s19  ;;  %720 = vrot.lane.b32.xlu0 %v2473_v0, %s2304_s19 }
  0x7b   : > { %668 = vrot.lane.b32.xlu1 %v2505_v4, %s2303_s18  ;;  %666 = vrot.lane.b32.xlu0 %v2507_v5, %s2303_s18 }
  0x7f   : > { %676 = vrot.lane.b32.xlu1 %v2513_v6, %s2303_s18  ;;  %674 = vrot.lane.b32.xlu0 %v2515_v7, %s2303_s18 }
  0x83   : > { %718 = vrot.lane.b32.xlu1 %v2505_v4, %s2304_s19  ;;  %716 = vrot.lane.b32.xlu0 %v2507_v5, %s2304_s19 }
  0x87   : > { %726 = vrot.lane.b32.xlu1 %v2513_v6, %s2304_s19  ;;  %724 = vrot.lane.b32.xlu0 %v2515_v7, %s2304_s19 }
  0x8b   : > { %789 = vrot.lane.b32.xlu1 %v2483_v3, %s2305_s20  ;;  %787 = vrot.lane.b32.xlu0 %v2475_v1, %s2305_s20 }
  0x8f   : > { %797 = vrot.lane.b32.xlu1 %v2481_v2, %s2305_s20  ;;  %795 = vrot.lane.b32.xlu0 %v2473_v0, %s2305_s20 }
  0x93   : > { %839 = vrot.lane.b32.xlu1 %v2483_v3, %s2306_s21  ;;  %837 = vrot.lane.b32.xlu0 %v2475_v1, %s2306_s21 }
  0x97   : > { %847 = vrot.lane.b32.xlu1 %v2481_v2, %s2306_s21  ;;  %845 = vrot.lane.b32.xlu0 %v2473_v0, %s2306_s21 }
  0x9b   : > { %793 = vrot.lane.b32.xlu1 %v2505_v4, %s2305_s20  ;;  %791 = vrot.lane.b32.xlu0 %v2507_v5, %s2305_s20 }
  0x9f   : > { %801 = vrot.lane.b32.xlu1 %v2513_v6, %s2305_s20  ;;  %799 = vrot.lane.b32.xlu0 %v2515_v7, %s2305_s20 }
  0xa3   : > { %889 = vrot.lane.b32.xlu1 %v2483_v3, %s3675_s22  ;;  %887 = vrot.lane.b32.xlu0 %v2475_v1, %s3675_s22 }
  0xa7   : > { %897 = vrot.lane.b32.xlu1 %v2481_v2, %s3675_s22  ;;  %895 = vrot.lane.b32.xlu0 %v2473_v0, %s3675_s22 }
  0xab   : > { %843 = vrot.lane.b32.xlu1 %v2505_v4, %s2306_s21  ;;  %841 = vrot.lane.b32.xlu0 %v2507_v5, %s2306_s21 }
  0xaf   : > { %851 = vrot.lane.b32.xlu1 %v2513_v6, %s2306_s21  ;;  %849 = vrot.lane.b32.xlu0 %v2515_v7, %s2306_s21 }
  0xb3   : > { %939 = vrot.lane.b32.xlu1 %v2483_v3, %s3656_s23  ;;  %937 = vrot.lane.b32.xlu0 %v2475_v1, %s3656_s23  ;;  %v2082_v3 = vld [vmem:[%s3641_s2 + $0x98] sm:$0xff] }
  0xb7   : > { %947 = vrot.lane.b32.xlu1 %v2481_v2, %s3656_s23  ;;  %945 = vrot.lane.b32.xlu0 %v2473_v0, %s3656_s23 }
  0xbb   : > { %893 = vrot.lane.b32.xlu1 %v2505_v4, %s3675_s22  ;;  %891 = vrot.lane.b32.xlu0 %v2507_v5, %s3675_s22 }
  0xbd   : > { %v2605_v8 = vpop.permute.xlu1 %577  ;;  %v2607_v9 = vpop.permute.xlu0 %569 }
  0xbe   : > { %v592_v46 = vsel %vm587_vm1, %v2605_v8, %v2607_v9 }
  0xbf   : > { %901 = vrot.lane.b32.xlu1 %v2513_v6, %s3675_s22  ;;  %899 = vrot.lane.b32.xlu0 %v2515_v7, %s3675_s22 }
  0xc1   : > { %v2613_v10 = vpop.permute.xlu1 %579  ;;  %v2615_v11 = vpop.permute.xlu0 %571 }
  0xc2   : > { %v593_v51 = vsel %vm587_vm1, %v2613_v10, %v2615_v11 }
  0xc3   : > { %943 = vrot.lane.b32.xlu1 %v2505_v4, %s3656_s23  ;;  %941 = vrot.lane.b32.xlu0 %v2507_v5, %s3656_s23 }
  0xc5   : > { %v615_v13 = vpop.permute.xlu1 %614  ;;  %v2623_v14 = vpop.permute.xlu0 %612 }
  0xc7   : > { %951 = vrot.lane.b32.xlu1 %v2513_v6, %s3656_s23  ;;  %949 = vrot.lane.b32.xlu0 %v2515_v7, %s3656_s23 }
  0xc9   : > { %v623_v15 = vpop.permute.xlu1 %622  ;;  %v621_v16 = vpop.permute.xlu0 %620 }
  0xca   : > { %v630_v61 = vsel %vm628_vm0, %v615_v13, %v623_v15  ;;  %v634_v62 = vsel %vm628_vm0, %v623_v15, %v615_v13  ;;  %v629_v18 = vsel %vm628_vm0, %v2623_v14, %v621_v16  ;;  %v597_v13 = vld [vmem:[%s3641_s2 + $0x8] sm:$0xff]  ;;  %v588_v15 = vsel %vm587_vm1, %v2607_v9, %v2605_v8  ;;  %v2081_v9 = vld [vmem:[%s3641_s2 + $0x90] sm:$0xff] }
  0xcb   : > { %993 = vperm.xlu0 %2219, %v989_v17   ;;  %998 = vperm.xlu1 %2220, %v990_v19   ;;  %v2072_v17 = vld [vmem:[%s3641_s2 + $0x48] sm:$0xff]  ;;  %v633_v19 = vsel %vm628_vm0, %v621_v16, %v2623_v14  ;;  %v599_v14 = vld [vmem:[%s3641_s2 + $0x18] sm:$0xff]  ;;  %v589_v16 = vsel %vm587_vm1, %v2615_v11, %v2613_v10  ;;  %v2784_v11 = vmul.f32 %v2096_v59, %v2473_v0 }
  0xcc   : > { %v605_v59 = vmul.f32 %v597_v13, %v588_v15  ;;  %v607_v0 = vmul.f32 %v599_v14, %v589_v16 }
  0xcd   : > { %v2635_v20 = vpop.permute.xlu1 %664  ;;  %v2637_v21 = vpop.permute.xlu0 %662 }
  0xd1   : > { %v673_v22 = vpop.permute.xlu1 %672  ;;  %v2639_v23 = vpop.permute.xlu0 %670 }
  0xd2   : > { %v680_v2 = vsel %vm678_vm2, %v2635_v20, %v673_v22  ;;  %v684_v10 = vsel %vm678_vm2, %v673_v22, %v2635_v20  ;;  %v2099_v20 = vld [vmem:[%s3641_s2 + $0x120] sm:$0xff]  ;;  %v2100_v22 = vld [vmem:[%s3641_s2 + $0x128] sm:$0xff] }
  0xd3   : > { %v2829_v13 = vmul.f32 %v2100_v22, %v2515_v7 }
  0xd5   : > { %v2641_v24 = vpop.permute.xlu1 %575  ;;  %v2643_v25 = vpop.permute.xlu0 %573  ;;  %3701 = vst [vmem:[#allocation25_spill] sm:$0xff] %v2829_v13 }
  0xd9   : > { %v2645_v26 = vpop.permute.xlu1 %583  ;;  %v2647_v27 = vpop.permute.xlu0 %581 }
  0xdd   : > { %v2649_v28 = vpop.permute.xlu1 %618  ;;  %v2651_v29 = vpop.permute.xlu0 %616 }
  0xe1   : > { %v2653_v30 = vpop.permute.xlu1 %626  ;;  %v2655_v31 = vpop.permute.xlu0 %624 }
  0xe5   : > { %v2657_v32 = vpop.permute.xlu1 %714  ;;  %v2659_v33 = vpop.permute.xlu0 %712 }
  0xe9   : > { %v2661_v34 = vpop.permute.xlu1 %722  ;;  %v2663_v35 = vpop.permute.xlu0 %720 }
  0xea   : > { %v730_v16 = vsel %vm728_vm3, %v2657_v32, %v2661_v34  ;;  %v729_v22 = vsel %vm728_vm3, %v2659_v33, %v2663_v35 }
  0xed   : > { %v2665_v36 = vpop.permute.xlu1 %668  ;;  %v2667_v37 = vpop.permute.xlu0 %666 }
  0xf1   : > { %v2669_v38 = vpop.permute.xlu1 %676  ;;  %v2671_v39 = vpop.permute.xlu0 %674 }
  0xf5   : > { %v2673_v40 = vpop.permute.xlu1 %718  ;;  %v2675_v41 = vpop.permute.xlu0 %716 }
  0xf6   : > { %3692 = vst [vmem:[#allocation16_spill] sm:$0xff] %v2673_v40  ;;  %3693 = vst [vmem:[#allocation17_spill] sm:$0xff] %v2675_v41  ;;  %v2787_v41 = vmul.f32 %v2095_v58, %v2475_v1  ;;  %v2102_v40 = vld [vmem:[%s3641_s2 + $0x138] sm:$0xff]  ;;  %v604_v58 = vmul.f32 %v596_v54, %v592_v46  ;;  %v606_v1 = vmul.f32 %v598_v50, %v593_v51 }
  0xf7   : > { %v683_v54 = vsel %vm678_vm2, %v2639_v23, %v2637_v21  ;;  %v595_v51 = vsel %vm587_vm1, %v2645_v26, %v2641_v24 }
  0xf9   : > { %v2677_v42 = vpop.permute.xlu1 %726  ;;  %v2679_v43 = vpop.permute.xlu0 %724 }
  0xfa   : > { %3694 = vst [vmem:[#allocation18_spill] sm:$0xff] %v2679_v43  ;;  %v2101_v43 = vld [vmem:[%s3641_s2 + $0x130] sm:$0xff] }
  0xfd   : > { %v2681_v44 = vpop.permute.xlu1 %789  ;;  %v2683_v45 = vpop.permute.xlu0 %787 }
 0x101   : > { %v2685_v47 = vpop.permute.xlu1 %797  ;;  %v2687_v48 = vpop.permute.xlu0 %795 }
 0x105   : > { %v2698_v52 = vpop.permute.xlu1 %839  ;;  %v2700_v53 = vpop.permute.xlu0 %837 }
 0x106   : > { %3695 = vst [vmem:[#allocation19_spill] sm:$0xff] %v2698_v52  ;;  %3696 = vst [vmem:[#allocation20_spill] sm:$0xff] %v2700_v53  ;;  %v648_v53 = vmul.f32 %v2073_v55, %v634_v62  ;;  %v646_v52 = vmul.f32 %v2071_v63, %v633_v19  ;;  %v698_v55 = vmul.f32 %v2081_v9, %v684_v10  ;;  %v2080_v62 = vld [vmem:[%s3641_s2 + $0x88] sm:$0xff]  ;;  %v2078_v9 = vld [vmem:[%s3641_s2 + $0x78] sm:$0xff] }
 0x107   : > { %v679_v63 = vsel %vm678_vm2, %v2637_v21, %v2639_v23  ;;  %v2826_v19 = vmul.f32 %v2099_v20, %v2507_v5  ;;  %v632_v10 = vsel %vm628_vm0, %v2649_v28, %v2653_v30  ;;  %v2088_v20 = vld [vmem:[%s3641_s2 + $0xc8] sm:$0xff] }
 0x108   : > { %v656_v15 = vadd.f32 %v648_v53, %v606_v1  ;;  %v654_v50 = vadd.f32 %v646_v52, %v604_v58  ;;  %v697_v14 = vmul.f32 %v2080_v62, %v679_v63  ;;  %v602_v52 = vld [vmem:[%s3641_s2 + $0x30] sm:$0xff]  ;;  %v591_v53 = vsel %vm587_vm1, %v2641_v24, %v2645_v26  ;;  %v2087_v26 = vld [vmem:[%s3641_s2 + $0xc0] sm:$0xff] }
 0x109   : > { %v2767_v12 = vpop.permute.xlu1 %847  ;;  %v2769_v8 = vpop.permute.xlu0 %845  ;;  %3700 = vst [vmem:[#allocation24_spill] sm:$0xff] %v2826_v19  ;;  %v636_v24 = vsel %vm628_vm0, %v2653_v30, %v2649_v28  ;;  %v733_v58 = vsel %vm728_vm3, %v2663_v35, %v2659_v33  ;;  %v603_v28 = vld [vmem:[%s3641_s2 + $0x38] sm:$0xff]  ;;  %v2075_v30 = vld [vmem:[%s3641_s2 + $0x60] sm:$0xff]  ;;  %v635_v33 = vsel %vm628_vm0, %v2655_v31, %v2651_v29  ;;  %v590_v63 = vsel %vm587_vm1, %v2643_v25, %v2647_v27 }
 0x10a   : > { %3697 = vst [vmem:[#allocation21_spill] sm:$0xff] %v2767_v12  ;;  %3698 = vst [vmem:[#allocation22_spill] sm:$0xff] %v2769_v8  ;;  %v649_v8 = vmul.f32 %v2074_v60, %v630_v61  ;;  %v647_v12 = vmul.f32 %v2072_v17, %v629_v18  ;;  %v699_v60 = vmul.f32 %v2082_v3, %v680_v2  ;;  %v2079_v61 = vld [vmem:[%s3641_s2 + $0x80] sm:$0xff] }
 0x10b   : > { %v2820_v3 = vmul.f32 %v2101_v43, %v2505_v4  ;;  %v2823_v18 = vmul.f32 %v2102_v40, %v2513_v6  ;;  %v696_v23 = vmul.f32 %v2079_v61, %v683_v54  ;;  %v2089_v43 = vld [vmem:[%s3641_s2 + $0xd0] sm:$0xff]  ;;  %v2090_v40 = vld [vmem:[%s3641_s2 + $0xd8] sm:$0xff]  ;;  %v706_v1 = vadd.f32 %v698_v55, %v656_v15  ;;  %v600_v15 = vld [vmem:[%s3641_s2 + $0x20] sm:$0xff] }
 0x10c   : > { %v657_v46 = vadd.f32 %v649_v8, %v607_v0  ;;  %v655_v21 = vadd.f32 %v647_v12, %v605_v59  ;;  %v734_v0 = vsel %vm728_vm3, %v2661_v34, %v2657_v32  ;;  %v2077_v32 = vld [vmem:[%s3641_s2 + $0x70] sm:$0xff]  ;;  %v2076_v59 = vld [vmem:[%s3641_s2 + $0x68] sm:$0xff]  ;;  %v631_v55 = vsel %vm628_vm0, %v2651_v29, %v2655_v31 }
 0x10d   : > { %v2815_v17 = vpop.permute.xlu1 %793  ;;  %v2817_v2 = vpop.permute.xlu0 %791  ;;  %3699 = vst [vmem:[#allocation23_spill] sm:$0xff] %v2823_v18  ;;  %v748_v35 = vmul.f32 %v2089_v43, %v734_v0  ;;  %v704_v61 = vadd.f32 %v696_v23, %v654_v50  ;;  %v594_v54 = vsel %vm587_vm1, %v2647_v27, %v2643_v25  ;;  %v601_v29 = vld [vmem:[%s3641_s2 + $0x28] sm:$0xff]  ;;  %v652_v31 = vmul.f32 %v2077_v32, %v636_v24  ;;  %v2085_v4 = vld [vmem:[%s3641_s2 + $0xb0] sm:$0xff]  ;;  %v2086_v32 = vld [vmem:[%s3641_s2 + $0xb8] sm:$0xff] }
 0x10e   : > { %v707_v12 = vadd.f32 %v699_v60, %v657_v46  ;;  %v749_v60 = vmul.f32 %v2090_v40, %v730_v16  ;;  %v705_v62 = vadd.f32 %v697_v14, %v655_v21  ;;  %v653_v46 = vmul.f32 %v2078_v9, %v632_v10 }
 0x10f   : > { %v746_v50 = vmul.f32 %v2087_v26, %v733_v58  ;;  %v747_v21 = vmul.f32 %v2088_v20, %v729_v22  ;;  %v610_v43 = vmul.f32 %v602_v52, %v595_v51  ;;  %v611_v40 = vmul.f32 %v603_v28, %v591_v53  ;;  %v2083_v28 = vld [vmem:[%s3641_s2 + $0xa0] sm:$0xff] }
 0x110   : > { %v650_v16 = vmul.f32 %v2075_v30, %v635_v33  ;;  %v651_v25 = vmul.f32 %v2076_v59, %v631_v55  ;;  %v756_v27 = vadd.f32 %v748_v35, %v706_v1  ;;  %v757_v0 = vadd.f32 %v749_v60, %v707_v12  ;;  %v2105_v55 = vld [vmem:[%s3641_s2 + $0x150] sm:$0xff]  ;;  %v2106_v60 = vld [vmem:[%s3641_s2 + $0x158] sm:$0xff] }
 0x111   : > { %v2860_v34 = vpop.permute.xlu1 %801  ;;  %v2862_v8 = vpop.permute.xlu0 %799  ;;  %v682_v9 = vsel %vm678_vm2, %v2665_v36, %v2669_v38  ;;  %v686_v52 = vsel %vm678_vm2, %v2669_v38, %v2665_v36  ;;  %v608_v1 = vmul.f32 %v600_v15, %v594_v54  ;;  %v609_v12 = vmul.f32 %v601_v29, %v590_v63  ;;  %v2084_v36 = vld [vmem:[%s3641_s2 + $0xa8] sm:$0xff] }
 0x112   : > { %v660_v53 = vadd.f32 %v652_v31, %v610_v43  ;;  %v661_v51 = vadd.f32 %v653_v46, %v611_v40  ;;  %v754_v10 = vadd.f32 %v746_v50, %v704_v61  ;;  %v755_v24 = vadd.f32 %v747_v21, %v705_v62  ;;  %v2093_v50 = vld [vmem:[%s3641_s2 + $0xf0] sm:$0xff] }
 0x113   : > { %v702_v22 = vmul.f32 %v2085_v4, %v686_v52  ;;  %v703_v58 = vmul.f32 %v2086_v32, %v682_v9  ;;  %v681_v38 = vsel %vm678_vm2, %v2667_v37, %v2671_v39  ;;  %v685_v30 = vsel %vm678_vm2, %v2671_v39, %v2667_v37  ;;  %v3704_v32 = vld [vmem:[#allocation19_spill] sm:$0xff]  ;;  %v2111_v52 = vld [vmem:[%s3641_s2 + $0x180] sm:$0xff] }
 0x114   : > { %v2954_v4 = vadd.f32 %v650_v16, %v608_v1  ;;  %v2956_v59 = vadd.f32 %v651_v25, %v609_v12  ;;  %v781_v33 = vadd.f32 %v2712_v56, %v756_v27  ;;  %v782_v35 = vadd.f32 %v2715_v57, %v757_v0  ;;  %v2103_v56 = vld [vmem:[%s3641_s2 + $0x140] sm:$0xff]  ;;  %v2104_v57 = vld [vmem:[%s3641_s2 + $0x148] sm:$0xff]  ;;  %v2113_v25 = vld [vmem:[%s3641_s2 + $0x190] sm:$0xff] }
 0x115   : > { %v2920_v23 = vpop.permute.xlu1 %889  ;;  %v2922_v14 = vpop.permute.xlu0 %887  ;;  %v805_v37 = vsel %vm803_vm4, %v2681_v44, %v2685_v47  ;;  %v809_v39 = vsel %vm803_vm4, %v2685_v47, %v2681_v44  ;;  %v804_v61 = vsel %vm803_vm4, %v2683_v45, %v2687_v48  ;;  %v808_v62 = vsel %vm803_vm4, %v2687_v48, %v2683_v45  ;;  %v2094_v45 = vld [vmem:[%s3641_s2 + $0xf8] sm:$0xff]  ;;  %v3702_v48 = vld [vmem:[#allocation16_spill] sm:$0xff]  ;;  %v3703_v0 = vld [vmem:[#allocation21_spill] sm:$0xff] }
 0x116   : > { %v700_v63 = vmul.f32 %v2083_v28, %v685_v30  ;;  %v701_v44 = vmul.f32 %v2084_v36, %v681_v38  ;;  %v780_v47 = vadd.f32 %v2784_v11, %v755_v24  ;;  %v779_v54 = vadd.f32 %v2787_v41, %v754_v10  ;;  %v2114_v27 = vld [vmem:[%s3641_s2 + $0x198] sm:$0xff]  ;;  %v2112_v1 = vld [vmem:[%s3641_s2 + $0x188] sm:$0xff]  ;;  %v3705_v12 = vld [vmem:[#allocation22_spill] sm:$0xff] }
 0x117   : > { %v710_v31 = vadd.f32 %v702_v22, %v660_v53  ;;  %v711_v46 = vadd.f32 %v703_v58, %v661_v51  ;;  %v732_v11 = vsel %vm728_vm3, %v3702_v48, %v2677_v42  ;;  %v736_v41 = vsel %vm728_vm3, %v2677_v42, %v3702_v48  ;;  %v3706_v53 = vld [vmem:[#allocation20_spill] sm:$0xff]  ;;  %v3707_v58 = vld [vmem:[#allocation18_spill] sm:$0xff]  ;;  %v3708_v28 = vld [vmem:[#allocation17_spill] sm:$0xff] }
 0x118   : > { %v823_v21 = vmul.f32 %v2105_v55, %v805_v37  ;;  %v824_v43 = vmul.f32 %v2106_v60, %v809_v39  ;;  %v821_v40 = vmul.f32 %v2103_v56, %v804_v61  ;;  %v822_v16 = vmul.f32 %v2104_v57, %v808_v62  ;;  %v2121_v30 = vld [vmem:[%s3641_s2 + $0x1d0] sm:$0xff]  ;;  %v2122_v37 = vld [vmem:[%s3641_s2 + $0x1d8] sm:$0xff]  ;;  %v2119_v57 = vld [vmem:[%s3641_s2 + $0x1c0] sm:$0xff] }
 0x119   : > { %v898_v26 = vpop.permute.xlu1 %897  ;;  %v896_v20 = vpop.permute.xlu0 %895  ;;  %v855_v9 = vsel %vm853_vm5, %v3704_v32, %v3703_v0  ;;  %v859_v42 = vsel %vm853_vm5, %v3703_v0, %v3704_v32  ;;  %v854_v51 = vsel %vm853_vm5, %v3706_v53, %v3705_v12  ;;  %v858_v10 = vsel %vm853_vm5, %v3705_v12, %v3706_v53  ;;  %v2120_v61 = vld [vmem:[%s3641_s2 + $0x1c8] sm:$0xff] }
 0x11a   : > { %v752_v24 = vmul.f32 %v2093_v50, %v736_v41  ;;  %v753_v22 = vmul.f32 %v2094_v45, %v732_v11  ;;  %v731_v36 = vsel %vm728_vm3, %v3708_v28, %v3707_v58  ;;  %v735_v38 = vsel %vm728_vm3, %v3707_v58, %v3708_v28 }
 0x11b   : > { %v905_v39 = vsel %vm903_vm6, %v2920_v23, %v898_v26  ;;  %v909_v56 = vsel %vm903_vm6, %v898_v26, %v2920_v23  ;;  %v904_v62 = vsel %vm903_vm6, %v2922_v14, %v896_v20  ;;  %v908_v50 = vsel %vm903_vm6, %v896_v20, %v2922_v14  ;;  %v2091_v23 = vld [vmem:[%s3641_s2 + $0xe0] sm:$0xff]  ;;  %v2092_v26 = vld [vmem:[%s3641_s2 + $0xe8] sm:$0xff] }
 0x11c   : > { %v873_v45 = vmul.f32 %v2113_v25, %v855_v9  ;;  %v874_v48 = vmul.f32 %v2114_v27, %v859_v42  ;;  %v871_v11 = vmul.f32 %v2111_v52, %v854_v51  ;;  %v872_v41 = vmul.f32 %v2112_v1, %v858_v10  ;;  %v2110_v51 = vld [vmem:[%s3641_s2 + $0x178] sm:$0xff] }
 0x11d   : > { %v2990_v15 = vpop.permute.xlu1 %843  ;;  %v2992_v29 = vpop.permute.xlu0 %841  ;;  %v831_v0 = vadd.f32 %v823_v21, %v781_v33  ;;  %v832_v32 = vadd.f32 %v824_v43, %v782_v35  ;;  %v829_v12 = vadd.f32 %v821_v40, %v779_v54  ;;  %v830_v53 = vadd.f32 %v822_v16, %v780_v47  ;;  %v2129_v33 = vld [vmem:[%s3641_s2 + $0x210] sm:$0xff] }
 0x11e   : > { %v923_v58 = vmul.f32 %v2121_v30, %v905_v39  ;;  %v924_v28 = vmul.f32 %v2122_v37, %v909_v56  ;;  %v921_v5 = vmul.f32 %v2119_v57, %v904_v62  ;;  %v922_v14 = vmul.f32 %v2120_v61, %v908_v50  ;;  %v2107_v37 = vld [vmem:[%s3641_s2 + $0x160] sm:$0xff] }
 0x11f   : > { %v708_v7 = vadd.f32 %v700_v63, %v2954_v4  ;;  %v709_v13 = vadd.f32 %v701_v44, %v2956_v59  ;;  %v750_v19 = vmul.f32 %v2091_v23, %v735_v38  ;;  %v751_v18 = vmul.f32 %v2092_v26, %v731_v36  ;;  %v2130_v59 = vld [vmem:[%s3641_s2 + $0x218] sm:$0xff]  ;;  %v2127_v63 = vld [vmem:[%s3641_s2 + $0x200] sm:$0xff]  ;;  %v2128_v44 = vld [vmem:[%s3641_s2 + $0x208] sm:$0xff] }
 0x120   : > { %v881_v25 = vadd.f32 %v873_v45, %v831_v0  ;;  %v879_v27 = vadd.f32 %v871_v11, %v829_v12  ;;  %v880_v35 = vadd.f32 %v872_v41, %v830_v53  ;;  %v882_v47 = vadd.f32 %v874_v48, %v832_v32  ;;  %v2117_v45 = vld [vmem:[%s3641_s2 + $0x1b0] sm:$0xff]  ;;  %v2115_v0 = vld [vmem:[%s3641_s2 + $0x1a0] sm:$0xff]  ;;  %v2116_v32 = vld [vmem:[%s3641_s2 + $0x1a8] sm:$0xff] }
 0x121   : > { %v3048_v55 = vpop.permute.xlu1 %851  ;;  %v3050_v60 = vpop.permute.xlu0 %849  ;;  %v760_v54 = vadd.f32 %v752_v24, %v710_v31  ;;  %v761_v21 = vadd.f32 %v753_v22, %v711_v46  ;;  %v807_v43 = vsel %vm803_vm4, %v2815_v17, %v2860_v34  ;;  %v811_v4 = vsel %vm803_vm4, %v2860_v34, %v2815_v17 }
 0x122   : > { %v931_v31 = vadd.f32 %v923_v58, %v881_v25  ;;  %v929_v46 = vadd.f32 %v921_v5, %v879_v27  ;;  %v930_v9 = vadd.f32 %v922_v14, %v880_v35  ;;  %v932_v42 = vadd.f32 %v924_v28, %v882_v47  ;;  %v2109_v5 = vld [vmem:[%s3641_s2 + $0x170] sm:$0xff]  ;;  %v3710_v28 = vld [vmem:[#allocation24_spill] sm:$0xff]  ;;  %v2126_v47 = vld [vmem:[%s3641_s2 + $0x1f8] sm:$0xff] }
 0x123   : > { %v758_v38 = vadd.f32 %v750_v19, %v708_v7  ;;  %v759_v30 = vadd.f32 %v751_v18, %v709_v13  ;;  %v806_v39 = vsel %vm803_vm4, %v2817_v2, %v2862_v8  ;;  %v810_v56 = vsel %vm803_vm4, %v2862_v8, %v2817_v2  ;;  %v2118_v2 = vld [vmem:[%s3641_s2 + $0x1b8] sm:$0xff]  ;;  %v2125_v27 = vld [vmem:[%s3641_s2 + $0x1f0] sm:$0xff] }
 0x124   : > { %v827_v62 = vmul.f32 %v2109_v5, %v807_v43  ;;  %v828_v50 = vmul.f32 %v2110_v51, %v811_v4  ;;  %v825_v23 = vmul.f32 %v2107_v37, %v806_v39  ;;  %v857_v8 = vsel %vm853_vm5, %v2990_v15, %v3048_v55 }
 0x125   : > { %v940_v20 = vpop.permute.xlu1 %939  ;;  %v938_v6 = vpop.permute.xlu0 %937  ;;  %v861_v41 = vsel %vm853_vm5, %v3048_v55, %v2990_v15  ;;  %v856_v12 = vsel %vm853_vm5, %v2992_v29, %v3050_v60  ;;  %v860_v53 = vsel %vm853_vm5, %v3050_v60, %v2992_v29  ;;  %v785_v15 = vadd.f32 %v2820_v3, %v760_v54  ;;  %v3709_v55 = vld [vmem:[#allocation23_spill] sm:$0xff]  ;;  %v2123_v60 = vld [vmem:[%s3641_s2 + $0x1e0] sm:$0xff]  ;;  %v2124_v54 = vld [vmem:[%s3641_s2 + $0x1e8] sm:$0xff] }
 0x126   : > { %v786_v58 = vadd.f32 %v3709_v55, %v761_v21  ;;  %v783_v14 = vadd.f32 %v3710_v28, %v758_v38  ;;  %v877_v4 = vmul.f32 %v2117_v45, %v857_v8  ;;  %v2131_v38 = vld [vmem:[%s3641_s2 + $0x220] sm:$0xff] }
 0x129   : > { %v948_v40 = vpop.permute.xlu1 %947  ;;  %v946_v16 = vpop.permute.xlu0 %945 }
 0x12a   : > { %v955_v17 = vsel %vm953_vm7, %v940_v20, %v948_v40  ;;  %v959_v34 = vsel %vm953_vm7, %v948_v40, %v940_v20  ;;  %v954_v52 = vsel %vm953_vm7, %v938_v6, %v946_v16  ;;  %v958_v1 = vsel %vm953_vm7, %v946_v16, %v938_v6  ;;  %v2108_v6 = vld [vmem:[%s3641_s2 + $0x168] sm:$0xff] }
 0x12b   : > { %v973_v10 = vmul.f32 %v2129_v33, %v955_v17  ;;  %v974_v24 = vmul.f32 %v2130_v59, %v959_v34  ;;  %v971_v22 = vmul.f32 %v2127_v63, %v954_v52  ;;  %v972_v36 = vmul.f32 %v2128_v44, %v958_v1  ;;  %v3711_v20 = vld [vmem:[#allocation25_spill] sm:$0xff] }
 0x12c   : > { %v826_v26 = vmul.f32 %v2108_v6, %v810_v56  ;;  %v784_v25 = vadd.f32 %v3711_v20, %v759_v30  ;;  %v878_v59 = vmul.f32 %v2118_v2, %v861_v41  ;;  %v875_v63 = vmul.f32 %v2115_v0, %v856_v12  ;;  %v2132_v30 = vld [vmem:[%s3641_s2 + $0x228] sm:$0xff]  ;;  %v987_v0 = vld [vmem:[%s3642_s3] sm:$0xff] }
 0x12d   : > { %v894_v7 = vpop.permute.xlu1 %893  ;;  %v892_v18 = vpop.permute.xlu0 %891  ;;  %v980_v19 = vadd.f32 %v972_v36, %v930_v9  ;;  %v982_v13 = vadd.f32 %v974_v24, %v932_v42  ;;  %v979_v57 = vadd.f32 %v971_v22, %v929_v46  ;;  %v981_v61 = vadd.f32 %v973_v10, %v931_v31  ;;  %v2133_v22 = vld [vmem:[%s3641_s2 + $0x230] sm:$0xff]  ;;  %v2134_v36 = vld [vmem:[%s3641_s2 + $0x238] sm:$0xff]  ;;  %v988_v12 = vld [vmem:[%s3642_s3 + $0x8] sm:$0xff] }
 0x12e   : > { %v876_v44 = vmul.f32 %v2116_v32, %v860_v53  ;;  %v835_v31 = vadd.f32 %v827_v62, %v785_v15  ;;  %v836_v46 = vadd.f32 %v828_v50, %v786_v58  ;;  %v833_v40 = vadd.f32 %v825_v23, %v783_v14 }
 0x12f   : > { %v2158_v48 = vpack.c.bf16 %v982_v13, %v980_v19  ;;  %v2160_v11 = vpack.c.bf16 %v981_v61, %v979_v57  ;;  %v834_v16 = vadd.f32 %v826_v26, %v784_v25  ;;  %v3712_v32 = vmov 0.0  }
 0x130   : > { %v885_v5 = vadd.f32 %v877_v4, %v835_v31  ;;  %v886_v51 = vadd.f32 %v878_v59, %v836_v46  ;;  %v883_v10 = vadd.f32 %v875_v63, %v833_v40 }
 0x131   : > { %v902_v33 = vpop.permute.xlu1 %901  ;;  %2159 = vmatprep.subr.bf16.mxu1 %v2158_v48  ;;  %v900_v35 = vpop.permute.xlu0 %899  ;;  %v884_v24 = vadd.f32 %v876_v44, %v834_v16 }
 0x132   : > { %v907_v3 = vsel %vm903_vm6, %v894_v7, %v902_v33  ;;  %v911_v29 = vsel %vm903_vm6, %v902_v33, %v894_v7  ;;  %v906_v21 = vsel %vm903_vm6, %v892_v18, %v900_v35  ;;  %v910_v43 = vsel %vm903_vm6, %v900_v35, %v892_v18  ;;  %2161 = vmatpush1.bf16.msra.mxu1 %v2160_v11 }
 0x133   : > { %v927_v9 = vmul.f32 %v2125_v27, %v907_v3  ;;  %v928_v42 = vmul.f32 %v2126_v47, %v911_v29  ;;  %v925_v17 = vmul.f32 %v2123_v60, %v906_v21  ;;  %v926_v34 = vmul.f32 %v2124_v54, %v910_v43 }
 0x135   : > { %v944_v52 = vpop.permute.xlu1 %943  ;;  %v942_v1 = vpop.permute.xlu0 %941  ;;  %v935_v37 = vadd.f32 %v927_v9, %v885_v5  ;;  %v936_v6 = vadd.f32 %v928_v42, %v886_v51  ;;  %v933_v39 = vadd.f32 %v925_v17, %v883_v10  ;;  %v934_v56 = vadd.f32 %v926_v34, %v884_v24  ;;  %v3716_v51 = vld [vmem:[#allocation9_spill] sm:$0xff]  ;;  %v3717_v10 = vld [vmem:[#allocation11_spill] sm:$0xff] }
 0x136   : > { %v2152_v24 = vpack.c.bf16 %v3717_v10, %v3716_v51  ;;  %v1164_v51 = vld [vmem:[#allocation2 + $0x50] sm:$0xff] }
 0x139   : > { %v952_v7 = vpop.permute.xlu1 %951  ;;  %v950_v18 = vpop.permute.xlu0 %949 }
 0x13a   : > { %v957_v19 = vsel %vm953_vm7, %v944_v52, %v952_v7  ;;  %v961_v13 = vsel %vm953_vm7, %v952_v7, %v944_v52  ;;  %v956_v57 = vsel %vm953_vm7, %v942_v1, %v950_v18  ;;  %v960_v61 = vsel %vm953_vm7, %v950_v18, %v942_v1  ;;  %v3714_v52 = vld [vmem:[#allocation8_spill] sm:$0xff]  ;;  %v3715_v1 = vld [vmem:[#allocation10_spill] sm:$0xff]  ;;  %v1315_v18 = vld [vmem:[%s3646_s7 + $0x8] sm:$0xff] }
 0x13b   : > { %v977_v62 = vmul.f32 %v2133_v22, %v957_v19  ;;  %v978_v50 = vmul.f32 %v2134_v36, %v961_v13  ;;  %v975_v23 = vmul.f32 %v2131_v38, %v956_v57  ;;  %v976_v26 = vmul.f32 %v2132_v30, %v960_v61  ;;  %v3718_v22 = vld [vmem:[#allocation15_spill] sm:$0xff]  ;;  %v3719_v36 = vld [vmem:[#allocation14_spill] sm:$0xff]  ;;  %v3720_v30 = vld [vmem:[#allocation13_spill] sm:$0xff] }
 0x13c   : > { %v2150_v5 = vpack.c.bf16 %v3715_v1, %v3714_v52  ;;  %v2154_v38 = vpack.c.bf16 %v3719_v36, %v3718_v22  ;;  %v1314_v7 = vld [vmem:[%s3646_s7] sm:$0xff] }
 0x13d   : > { %v985_v45 = vadd.f32 %v977_v62, %v935_v37  ;;  %v986_v48 = vadd.f32 %v978_v50, %v936_v6  ;;  %v983_v11 = vadd.f32 %v975_v23, %v933_v39  ;;  %v984_v2 = vadd.f32 %v976_v26, %v934_v56  ;;  %v3721_v37 = vld [vmem:[#allocation12_spill] sm:$0xff]  ;;  %v480_v56 = vld [vmem:[%s3640_s1 + $0x8] sm:$0xff] }
 0x13e   : > { %2151 = vmatprep.subr.bf16.mxu0 %v2150_v5  ;;  %v2156_v6 = vpack.c.bf16 %v3721_v37, %v3720_v30  ;;  %v479_v39 = vld [vmem:[%s3640_s1] sm:$0xff]  ;;  %v1188_v37 = vld [vmem:[#allocation2 + $0x68] sm:$0xff] }
 0x13f   : > { %v2162_v8 = vpack.c.bf16 %v986_v48, %v984_v2  ;;  %v2164_v41 = vpack.c.bf16 %v985_v45, %v983_v11  ;;  %2153 = vmatpush1.bf16.msra.mxu0 %v2152_v24  ;;  %v1187_v30 = vld [vmem:[#allocation2 + $0x60] sm:$0xff] }
 0x140   : > { %2155 = vmatprep.subr.bf16.mxu0 %v2154_v38  ;;  %v1165_v38 = vld [vmem:[#allocation2 + $0x58] sm:$0xff] }
 0x141   : > { %2163 = vmatprep.subr.bf16.mxu1 %v2162_v8 }
 0x142   : > { %2165 = vmatpush1.bf16.msra.mxu1 %v2164_v41 }
 0x143   : > { %2157 = vmatpush1.bf16.msra.mxu0 %v2156_v6 }
 0x145   : > { %2135 = vmatmul.mubr.msk.f32.vlgmr.msra.gmra.mrb[0].mxu1 %vm481_vm8, %v987_v0 }
 0x146   : > { %1077 = vmatprep.mubr.f32.mxu1 %v3712_v32  ;;  %2069 = vmatmul.mubr.msk.f32.vlgmr.msra.gmra.mrb[0].mxu0 %vm481_vm8, %v479_v39 }
 0x147   : > { %558 = vmatprep.mubr.f32.mxu0 %v3712_v32 }
 0x149   : > { %2136 = vmatmul.mubr.msk.f32.gmra.mrb[2].mxu1 %vm481_vm8, %v988_v12 }
 0x14a   : > { %1710 = vmatprep.mubr.f32.mxu1 %v3712_v32  ;;  %v994_v53 = vpop.permute.xlu0 %993  ;;  %v999_v28 = vpop.permute.xlu1 %998  ;;  %2070 = vmatmul.mubr.msk.f32.gmra.mrb[2].mxu0 %vm481_vm8, %v480_v56 }
 0x14b   : > { %1397 = vmatprep.mubr.f32.mxu0 %v3712_v32 }
 0x218   : > { %v1073_v15 = vpop.f32.mrb[0].mxu1 }
 0x219   : > { %v1074_v55 = vadd.f32 %v1073_v15, %v994_v53  ;;  %v1075_v58 = vpop.f32.mrb[1].mxu1 }
 0x21a   : > { %v1076_v4 = vadd.f32 %v1075_v58, %v994_v53  ;;  %v1137_v58 = vld [vmem:[#allocation2 + $0x20] sm:$0xff] }
 0x21b   : > { %v1084_v14 = vadd.f32 3.0, %v1074_v55 }
 0x21c   : > { %v1079_v20 = vpop.f32.mrb[2].mxu1  ;;  %v1085_v59 = vadd.f32 3.0, %v1076_v4 }
 0x21d   : > { %v1088_v25 = vmax.f32 %v1084_v14, 0.0  ;;  %v1080_v27 = vadd.f32 %v1079_v20, %v999_v28  ;;  %v1081_v33 = vpop.f32.mrb[3].mxu1 }
 0x21e   : > { %v1082_v63 = vadd.f32 %v1081_v33, %v999_v28  ;;  %v1089_v44 = vmax.f32 %v1085_v59, 0.0  ;;  %v1138_v28 = vld [vmem:[#allocation2 + $0x28] sm:$0xff]  ;;  %v1139_v59 = vld [vmem:[#allocation2 + $0x30] sm:$0xff] }
 0x21f   : > { %v1092_v35 = vmin.f32 %v1088_v25, 6.0  ;;  %v1086_v47 = vadd.f32 3.0, %v1080_v27  ;;  %v1116_v25 = vld [vmem:[#allocation2] sm:$0xff] }
 0x220   : > { %v1087_v31 = vadd.f32 3.0, %v1082_v63  ;;  %v1093_v46 = vmin.f32 %v1089_v44, 6.0 }
 0x221   : > { %v1096_v3 = vmul.f32 0.16666667, %v1092_v35  ;;  %v1090_v29 = vmax.f32 %v1086_v47, 0.0  ;;  %v1118_v47 = vld [vmem:[#allocation2 + $0x10] sm:$0xff] }
 0x222   : > { %v1091_v40 = vmax.f32 %v1087_v31, 0.0  ;;  %v1097_v16 = vmul.f32 0.16666667, %v1093_v46 }
 0x223   : > { %v3211_v60 = vmul.f32 %v1096_v3, %v1074_v55  ;;  %v1094_v54 = vmin.f32 %v1090_v29, 6.0  ;;  %v1119_v3 = vld [vmem:[#allocation2 + $0x18] sm:$0xff] }
 0x224   : > { %v1095_v9 = vmin.f32 %v1091_v40, 6.0  ;;  %v3245_v42 = vmul.f32 %v1097_v16, %v1076_v4  ;;  %v1162_v16 = vld [vmem:[#allocation2 + $0x40] sm:$0xff] }
 0x225   : > { %v1098_v21 = vmul.f32 0.16666667, %v1094_v54  ;;  %1104 = vrot.lane.b32.xlu1 %v3211_v60, %s2301_s27 }
 0x226   : > { %v1099_v17 = vmul.f32 0.16666667, %v1095_v9  ;;  %v1163_v9 = vld [vmem:[#allocation2 + $0x48] sm:$0xff] }
 0x227   : > { %v3215_v43 = vmul.f32 %v1098_v21, %v1080_v27  ;;  %v1117_v27 = vld [vmem:[#allocation2 + $0x8] sm:$0xff] }
 0x228   : > { %v3251_v34 = vmul.f32 %v1099_v17, %v1082_v63  ;;  %v1140_v63 = vld [vmem:[#allocation2 + $0x38] sm:$0xff] }
 0x229   : > { %1106 = vrot.lane.b32.xlu0 %v3215_v43, %s2301_s27  ;;  %1124 = vrot.lane.b32.xlu1 %v3211_v60, %s2302_s17 }
 0x22d   : > { %1126 = vrot.lane.b32.xlu0 %v3215_v43, %s2302_s17  ;;  %1149 = vrot.lane.b32.xlu1 %v3211_v60, %s2303_s18 }
 0x231   : > { %1151 = vrot.lane.b32.xlu0 %v3215_v43, %s2303_s18  ;;  %1174 = vrot.lane.b32.xlu1 %v3211_v60, %s2304_s19 }
 0x235   : > { %1176 = vrot.lane.b32.xlu0 %v3215_v43, %s2304_s19  ;;  %1212 = vrot.lane.b32.xlu1 %v3211_v60, %s2305_s20 }
 0x239   : > { %1214 = vrot.lane.b32.xlu0 %v3215_v43, %s2305_s20  ;;  %1237 = vrot.lane.b32.xlu1 %v3211_v60, %s2306_s21 }
 0x23d   : > { %1239 = vrot.lane.b32.xlu0 %v3215_v43, %s2306_s21  ;;  %1262 = vrot.lane.b32.xlu1 %v3211_v60, %s3675_s22 }
 0x241   : > { %1264 = vrot.lane.b32.xlu0 %v3215_v43, %s3675_s22  ;;  %1287 = vrot.lane.b32.xlu1 %v3211_v60, %s3713_s29 }
 0x245   : > { %1289 = vrot.lane.b32.xlu0 %v3215_v43, %s3713_s29  ;;  %1108 = vrot.lane.b32.xlu1 %v3245_v42, %s2301_s27 }
 0x249   : > { %1110 = vrot.lane.b32.xlu0 %v3251_v34, %s2301_s27  ;;  %1128 = vrot.lane.b32.xlu1 %v3245_v42, %s2302_s17 }
 0x24d   : > { %1130 = vrot.lane.b32.xlu0 %v3251_v34, %s2302_s17  ;;  %1153 = vrot.lane.b32.xlu1 %v3245_v42, %s2303_s18 }
 0x251   : > { %1155 = vrot.lane.b32.xlu0 %v3251_v34, %s2303_s18  ;;  %1178 = vrot.lane.b32.xlu1 %v3245_v42, %s2304_s19 }
 0x255   : > { %1180 = vrot.lane.b32.xlu0 %v3251_v34, %s2304_s19  ;;  %1216 = vrot.lane.b32.xlu1 %v3245_v42, %s2305_s20 }
 0x259   : > { %1218 = vrot.lane.b32.xlu0 %v3251_v34, %s2305_s20  ;;  %1241 = vrot.lane.b32.xlu1 %v3245_v42, %s2306_s21 }
 0x25d   : > { %1243 = vrot.lane.b32.xlu0 %v3251_v34, %s2306_s21  ;;  %1266 = vrot.lane.b32.xlu1 %v3245_v42, %s3675_s22 }
 0x261   : > { %1268 = vrot.lane.b32.xlu0 %v3251_v34, %s3675_s22  ;;  %1291 = vrot.lane.b32.xlu1 %v3245_v42, %s3713_s29  ;;  %s3426_s22 = scalar_lea.vmem %s3652_s13, %s3722_s28 }
 0x265   : > { %1293 = vrot.lane.b32.xlu0 %v3251_v34, %s3713_s29  ;;  %1318 = vperm.xlu1 %2220, %v1314_v7  }
 0x269   : > { %1323 = vperm.xlu0 %2219, %v1315_v18  }
 0x297   : > { %v1105_v19 = vpop.permute.xlu1 %1104 }
 0x29b   : > { %v1107_v13 = vpop.permute.xlu0 %1106  ;;  %v1125_v57 = vpop.permute.xlu1 %1124 }
 0x29f   : > { %v1127_v61 = vpop.permute.xlu0 %1126  ;;  %v1150_v62 = vpop.permute.xlu1 %1149 }
 0x2a3   : > { %v1152_v50 = vpop.permute.xlu0 %1151  ;;  %v1175_v23 = vpop.permute.xlu1 %1174 }
 0x2a7   : > { %v3307_v26 = vpop.permute.xlu0 %1176  ;;  %v3309_v45 = vpop.permute.xlu1 %1212 }
 0x2ab   : > { %v3311_v48 = vpop.permute.xlu0 %1214  ;;  %v3313_v11 = vpop.permute.xlu1 %1237 }
 0x2af   : > { %v3315_v2 = vpop.permute.xlu0 %1239  ;;  %v3317_v8 = vpop.permute.xlu1 %1262 }
 0x2b3   : > { %v3319_v41 = vpop.permute.xlu0 %1264  ;;  %v3321_v0 = vpop.permute.xlu1 %1287 }
 0x2b7   : > { %v3323_v12 = vpop.permute.xlu0 %1289  ;;  %v1109_v53 = vpop.permute.xlu1 %1108 }
 0x2b8   : > { %v1112_v33 = vsel %vm587_vm1, %v1105_v19, %v1109_v53  ;;  %v1114_v35 = vsel %vm587_vm1, %v1109_v53, %v1105_v19 }
 0x2b9   : > { %v1120_v1 = vmul.f32 %v1116_v25, %v1114_v35  ;;  %v1121_v5 = vmul.f32 %v1117_v27, %v1112_v33  ;;  %v1190_v25 = vld [vmem:[#allocation2 + $0x78] sm:$0xff] }
 0x2bb   : > { %v1111_v15 = vpop.permute.xlu0 %1110  ;;  %v1129_v55 = vpop.permute.xlu1 %1128 }
 0x2bc   : > { %v1132_v14 = vsel %vm628_vm0, %v1125_v57, %v1129_v55  ;;  %v1134_v20 = vsel %vm628_vm0, %v1129_v55, %v1125_v57  ;;  %v1113_v29 = vsel %vm587_vm1, %v1107_v13, %v1111_v15  ;;  %v1115_v54 = vsel %vm587_vm1, %v1111_v15, %v1107_v13 }
 0x2bd   : > { %v1141_v21 = vmul.f32 %v1137_v58, %v1134_v20  ;;  %v1142_v4 = vmul.f32 %v1138_v28, %v1132_v14  ;;  %v1122_v10 = vmul.f32 %v1118_v47, %v1115_v54  ;;  %v1123_v24 = vmul.f32 %v1119_v3, %v1113_v29  ;;  %v1189_v20 = vld [vmem:[#allocation2 + $0x70] sm:$0xff]  ;;  %v1200_v47 = vld [vmem:[#allocation2 + $0x80] sm:$0xff]  ;;  %v1201_v3 = vld [vmem:[#allocation2 + $0x88] sm:$0xff] }
 0x2bf   : > { %v1131_v44 = vpop.permute.xlu0 %1130  ;;  %v1154_v31 = vpop.permute.xlu1 %1153  ;;  %v1145_v6 = vadd.f32 %v1141_v21, %v1120_v1  ;;  %v1146_v39 = vadd.f32 %v1142_v4, %v1121_v5  ;;  %v1226_v1 = vld [vmem:[#allocation2 + $0xa8] sm:$0xff] }
 0x2c0   : > { %v1133_v46 = vsel %vm628_vm0, %v1127_v61, %v1131_v44  ;;  %v1135_v40 = vsel %vm628_vm0, %v1131_v44, %v1127_v61  ;;  %v1157_v17 = vsel %vm678_vm2, %v1150_v62, %v1154_v31  ;;  %v1159_v52 = vsel %vm678_vm2, %v1154_v31, %v1150_v62  ;;  %v1202_v31 = vld [vmem:[#allocation2 + $0x90] sm:$0xff] }
 0x2c1   : > { %v1143_v22 = vmul.f32 %v1139_v59, %v1135_v40  ;;  %v1144_v36 = vmul.f32 %v1140_v63, %v1133_v46  ;;  %v1166_v56 = vmul.f32 %v1162_v16, %v1159_v52  ;;  %v1167_v7 = vmul.f32 %v1163_v9, %v1157_v17  ;;  %v1203_v46 = vld [vmem:[#allocation2 + $0x98] sm:$0xff]  ;;  %v1225_v52 = vld [vmem:[#allocation2 + $0xa0] sm:$0xff] }
 0x2c2   : > { %v1205_v40 = vmul.f32 %v1201_v3, %v3245_v42  ;;  %v1204_v16 = vmul.f32 %v1200_v47, %v3211_v60  ;;  %v1228_v42 = vld [vmem:[#allocation2 + $0xb8] sm:$0xff]  ;;  %v1206_v60 = vmul.f32 %v1202_v31, %v3215_v43 }
 0x2c3   : > { %v1156_v18 = vpop.permute.xlu0 %1155  ;;  %v1179_v19 = vpop.permute.xlu1 %1178  ;;  %v1147_v28 = vadd.f32 %v1143_v22, %v1122_v10  ;;  %v1148_v14 = vadd.f32 %v1144_v36, %v1123_v24  ;;  %v1170_v27 = vadd.f32 %v1166_v56, %v1145_v6  ;;  %v1171_v33 = vadd.f32 %v1167_v7, %v1146_v39  ;;  %v1227_v22 = vld [vmem:[#allocation2 + $0xb0] sm:$0xff] }
 0x2c4   : > { %v1158_v13 = vsel %vm678_vm2, %v1152_v50, %v1156_v18  ;;  %v1160_v57 = vsel %vm678_vm2, %v1156_v18, %v1152_v50  ;;  %v1182_v61 = vsel %vm728_vm3, %v1175_v23, %v1179_v19  ;;  %v1184_v62 = vsel %vm728_vm3, %v1179_v19, %v1175_v23  ;;  %v1250_v18 = vld [vmem:[#allocation2 + $0xc0] sm:$0xff]  ;;  %v1251_v19 = vld [vmem:[#allocation2 + $0xc8] sm:$0xff] }
 0x2c5   : > { %v1168_v53 = vmul.f32 %v1164_v51, %v1160_v57  ;;  %v1169_v15 = vmul.f32 %v1165_v38, %v1158_v13  ;;  %v1191_v55 = vmul.f32 %v1187_v30, %v1184_v62  ;;  %v1192_v58 = vmul.f32 %v1188_v37, %v1182_v61  ;;  %v1252_v61 = vld [vmem:[#allocation2 + $0xd0] sm:$0xff]  ;;  %v1253_v62 = vld [vmem:[#allocation2 + $0xd8] sm:$0xff] }
 0x2c6   : > { %v1207_v24 = vmul.f32 %v1203_v46, %v3251_v34 }
 0x2c7   : > { %v1181_v35 = vpop.permute.xlu0 %1180  ;;  %v1217_v50 = vpop.permute.xlu1 %1216  ;;  %v1172_v29 = vadd.f32 %v1168_v53, %v1147_v28  ;;  %v1173_v54 = vadd.f32 %v1169_v15, %v1148_v14  ;;  %v1195_v4 = vadd.f32 %v1191_v55, %v1170_v27  ;;  %v1196_v59 = vadd.f32 %v1192_v58, %v1171_v33  ;;  %v1275_v55 = vld [vmem:[#allocation2 + $0xe0] sm:$0xff]  ;;  %v1276_v58 = vld [vmem:[#allocation2 + $0xe8] sm:$0xff]  ;;  %v1277_v33 = vld [vmem:[#allocation2 + $0xf0] sm:$0xff] }
 0x2c8   : > { %v1183_v23 = vsel %vm728_vm3, %v3307_v26, %v1181_v35  ;;  %v1185_v21 = vsel %vm728_vm3, %v1181_v35, %v3307_v26  ;;  %v1220_v5 = vsel %vm803_vm4, %v3309_v45, %v1217_v50  ;;  %v1222_v26 = vsel %vm803_vm4, %v1217_v50, %v3309_v45  ;;  %v1278_v35 = vld [vmem:[#allocation2 + $0xf8] sm:$0xff] }
 0x2c9   : > { %v1193_v63 = vmul.f32 %v1189_v20, %v1185_v21  ;;  %v1194_v44 = vmul.f32 %v1190_v25, %v1183_v23  ;;  %v1209_v30 = vadd.f32 %v1205_v40, %v1196_v59  ;;  %v1208_v37 = vadd.f32 %v1204_v16, %v1195_v4  ;;  %v1300_v59 = vld [vmem:[#allocation2 + $0x100] sm:$0xff] }
 0x2ca   : > { %v1229_v6 = vmul.f32 %v1225_v52, %v1220_v5  ;;  %v1230_v45 = vmul.f32 %v1226_v1, %v1222_v26  ;;  %v1303_v52 = vld [vmem:[#allocation2 + $0x118] sm:$0xff] }
 0x2cb   : > { %v1197_v9 = vadd.f32 %v1193_v63, %v1172_v29  ;;  %v1198_v17 = vadd.f32 %v1194_v44, %v1173_v54  ;;  %v1219_v51 = vpop.permute.xlu0 %1218  ;;  %v1242_v10 = vpop.permute.xlu1 %1241  ;;  %v1301_v63 = vld [vmem:[#allocation2 + $0x108] sm:$0xff] }
 0x2cc   : > { %v1221_v36 = vsel %vm803_vm4, %v3311_v48, %v1219_v51  ;;  %v1223_v38 = vsel %vm803_vm4, %v1219_v51, %v3311_v48  ;;  %v1245_v43 = vsel %vm853_vm5, %v3313_v11, %v1242_v10  ;;  %v1247_v13 = vsel %vm853_vm5, %v1242_v10, %v3313_v11 }
 0x2cd   : > { %v1211_v39 = vadd.f32 %v1207_v24, %v1198_v17  ;;  %v1210_v56 = vadd.f32 %v1206_v60, %v1197_v9  ;;  %v1231_v7 = vmul.f32 %v1227_v22, %v1221_v36  ;;  %v1232_v34 = vmul.f32 %v1228_v42, %v1223_v38  ;;  %v1302_v17 = vld [vmem:[#allocation2 + $0x110] sm:$0xff] }
 0x2ce   : > { %v1233_v14 = vadd.f32 %v1229_v6, %v1208_v37  ;;  %v1234_v20 = vadd.f32 %v1230_v45, %v1209_v30  ;;  %v1254_v25 = vmul.f32 %v1250_v18, %v1245_v43  ;;  %v1255_v27 = vmul.f32 %v1251_v19, %v1247_v13 }
 0x2cf   : > { %v1244_v57 = vpop.permute.xlu0 %1243  ;;  %v1267_v48 = vpop.permute.xlu1 %1266  ;;  %v1235_v47 = vadd.f32 %v1231_v7, %v1210_v56  ;;  %v1236_v3 = vadd.f32 %v1232_v34, %v1211_v39  ;;  %v1312_v7 = vld [vmem:[%s3645_s6] sm:$0xff] }
 0x2d0   : > { %v1246_v53 = vsel %vm853_vm5, %v3315_v2, %v1244_v57  ;;  %v1248_v15 = vsel %vm853_vm5, %v1244_v57, %v3315_v2  ;;  %v1270_v28 = vsel %vm903_vm6, %v3317_v8, %v1267_v48  ;;  %v1272_v11 = vsel %vm903_vm6, %v1267_v48, %v3317_v8  ;;  %v554_v34 = vpop.f32.mrb[0].mxu0 }
 0x2d1   : > { %v1256_v50 = vmul.f32 %v1252_v61, %v1246_v53  ;;  %v1257_v2 = vmul.f32 %v1253_v62, %v1248_v15  ;;  %v1279_v23 = vmul.f32 %v1275_v55, %v1270_v28  ;;  %v1280_v21 = vmul.f32 %v1276_v58, %v1272_v11  ;;  %565 = vst [vmem:[%s3426_s22] sm:$0xff] %v554_v34  ;;  %v556_v18 = vpop.f32.mrb[1].mxu0  ;;  %v1445_v34 = vld [vmem:[#allocation4 + $0x18] sm:$0xff] }
 0x2d2   : > { %v1258_v16 = vadd.f32 %v1254_v25, %v1233_v14  ;;  %v1259_v9 = vadd.f32 %v1255_v27, %v1234_v20  ;;  %566 = vst [vmem:[%s3426_s22 + $0x8] sm:$0xff] %v556_v18  ;;  %v560_v19 = vpop.f32.mrb[2].mxu0 }
 0x2d3   : > { %v1269_v29 = vpop.permute.xlu0 %1268  ;;  %v1292_v54 = vpop.permute.xlu1 %1291  ;;  %v1260_v1 = vadd.f32 %v1256_v50, %v1235_v47  ;;  %v1261_v5 = vadd.f32 %v1257_v2, %v1236_v3  ;;  %567 = vst [vmem:[%s3426_s22 + $0x10] sm:$0xff] %v560_v19 }
 0x2d4   : > { %v1271_v4 = vsel %vm903_vm6, %v3319_v41, %v1269_v29  ;;  %v1273_v8 = vsel %vm903_vm6, %v1269_v29, %v3319_v41  ;;  %v1295_v46 = vsel %vm953_vm7, %v3321_v0, %v1292_v54  ;;  %v1297_v40 = vsel %vm953_vm7, %v1292_v54, %v3321_v0  ;;  %v562_v43 = vpop.f32.mrb[3].mxu0 }
 0x2d5   : > { %v1281_v44 = vmul.f32 %v1277_v33, %v1271_v4  ;;  %v1282_v31 = vmul.f32 %v1278_v35, %v1273_v8  ;;  %v1304_v26 = vmul.f32 %v1300_v59, %v1295_v46  ;;  %v1305_v41 = vmul.f32 %v1301_v63, %v1297_v40  ;;  %568 = vst [vmem:[%s3426_s22 + $0x18] sm:$0xff] %v562_v43 }
 0x2d6   : > { %v1283_v10 = vadd.f32 %v1279_v23, %v1258_v16  ;;  %v1284_v24 = vadd.f32 %v1280_v21, %v1259_v9 }
 0x2d7   : > { %v1294_v51 = vpop.permute.xlu0 %1293  ;;  %v1285_v0 = vadd.f32 %v1281_v44, %v1260_v1  ;;  %v1286_v60 = vadd.f32 %v1282_v31, %v1261_v5 }
 0x2d8   : > { %v1296_v22 = vsel %vm953_vm7, %v3323_v12, %v1294_v51  ;;  %v1298_v42 = vsel %vm953_vm7, %v1294_v51, %v3323_v12  ;;  %v1308_v30 = vadd.f32 %v1304_v26, %v1283_v10  ;;  %v1309_v37 = vadd.f32 %v1305_v41, %v1284_v24  ;;  %v1313_v12 = vld [vmem:[%s3645_s6 + $0x8] sm:$0xff] }
 0x2d9   : > { %v1306_v36 = vmul.f32 %v1302_v17, %v1296_v22  ;;  %v1307_v38 = vmul.f32 %v1303_v52, %v1298_v42 }
 0x2db   : > { %v1310_v6 = vadd.f32 %v1306_v36, %v1285_v0  ;;  %v1311_v45 = vadd.f32 %v1307_v38, %v1286_v60  ;;  %v1463_v38 = vld [vmem:[#allocation4 + $0x20] sm:$0xff] }
 0x2dd   : > { %v2168_v39 = vpack.c.bf16 %v1310_v6, %v1308_v30  ;;  %v2166_v56 = vpack.c.bf16 %v1311_v45, %v1309_v37  ;;  %v1464_v30 = vld [vmem:[#allocation4 + $0x28] sm:$0xff]  ;;  %v1442_v45 = vld [vmem:[#allocation4] sm:$0xff] }
 0x2df   : > { %2167 = vmatprep.subr.bf16.mxu0 %v2166_v56 }
 0x2e0   : > { %2169 = vmatpush1.bf16.msra.mxu0 %v2168_v39  ;;  %v1443_v39 = vld [vmem:[#allocation4 + $0x8] sm:$0xff] }
 0x2e3   : > { %2137 = vmatmul.mubr.msk.f32.vlgmr.msra.gmra.mrb[4].mxu0 %vm1326_vm9, %v1312_v7 }
 0x2e4   : > { %1403 = vmatprep.mubr.f32.mxu0 %v3712_v32  ;;  %v1319_v13 = vpop.permute.xlu1 %1318 }
 0x2e7   : > { %2138 = vmatmul.mubr.msk.f32.gmra.mrb[6].mxu0 %vm1326_vm9, %v1313_v12  ;;  %v1444_v12 = vld [vmem:[#allocation4 + $0x10] sm:$0xff] }
 0x2e8   : > { %1857 = vmatprep.mubr.f32.mxu0 %v3712_v32  ;;  %v1324_v53 = vpop.permute.xlu0 %1323 }
 0x3b6   : > { %v1399_v57 = vpop.f32.mrb[4].mxu0 }
 0x3b7   : > { %v1400_v48 = vadd.f32 %v1399_v57, %v1319_v13  ;;  %v1401_v61 = vpop.f32.mrb[5].mxu0  ;;  %v1465_v57 = vld [vmem:[#allocation4 + $0x30] sm:$0xff] }
 0x3b8   : > { %v1402_v3 = vadd.f32 %v1401_v61, %v1319_v13 }
 0x3b9   : > { %v1410_v62 = vadd.f32 3.0, %v1400_v48 }
 0x3ba   : > { %v1405_v15 = vpop.f32.mrb[6].mxu0  ;;  %v1411_v50 = vadd.f32 3.0, %v1402_v3 }
 0x3bb   : > { %v1414_v55 = vmax.f32 %v1410_v62, 0.0  ;;  %v1406_v58 = vadd.f32 %v1405_v15, %v1324_v53  ;;  %v1407_v28 = vpop.f32.mrb[7].mxu0 }
 0x3bc   : > { %v1408_v2 = vadd.f32 %v1407_v28, %v1324_v53  ;;  %v1415_v29 = vmax.f32 %v1411_v50, 0.0 }
 0x3bd   : > { %v1418_v11 = vmin.f32 %v1414_v55, 6.0  ;;  %v1412_v14 = vadd.f32 3.0, %v1406_v58  ;;  %v1488_v55 = vld [vmem:[#allocation4 + $0x40] sm:$0xff] }
 0x3be   : > { %v1413_v54 = vadd.f32 3.0, %v1408_v2  ;;  %v1419_v23 = vmin.f32 %v1415_v29, 6.0  ;;  %v1513_v29 = vld [vmem:[#allocation4 + $0x60] sm:$0xff] }
 0x3bf   : > { %v1422_v20 = vmul.f32 0.16666667, %v1418_v11  ;;  %v1416_v25 = vmax.f32 %v1412_v14, 0.0 }
 0x3c0   : > { %v1417_v21 = vmax.f32 %v1413_v54, 0.0  ;;  %v1423_v4 = vmul.f32 0.16666667, %v1419_v23  ;;  %v1514_v54 = vld [vmem:[#allocation4 + $0x68] sm:$0xff] }
 0x3c1   : > { %v3432_v27 = vmul.f32 %v1422_v20, %v1400_v48  ;;  %v1420_v33 = vmin.f32 %v1416_v25, 6.0  ;;  %v1466_v48 = vld [vmem:[#allocation4 + $0x38] sm:$0xff]  ;;  %v1490_v25 = vld [vmem:[#allocation4 + $0x50] sm:$0xff] }
 0x3c2   : > { %v1421_v8 = vmin.f32 %v1417_v21, 6.0  ;;  %v3466_v59 = vmul.f32 %v1423_v4, %v1402_v3 }
 0x3c3   : > { %v1424_v35 = vmul.f32 0.16666667, %v1420_v33  ;;  %1430 = vrot.lane.b32.xlu1 %v3432_v27, %s2301_s27 }
 0x3c4   : > { %v1425_v63 = vmul.f32 0.16666667, %v1421_v8 }
 0x3c5   : > { %v3436_v47 = vmul.f32 %v1424_v35, %v1406_v58  ;;  %v1489_v58 = vld [vmem:[#allocation4 + $0x48] sm:$0xff] }
 0x3c6   : > { %v3472_v44 = vmul.f32 %v1425_v63, %v1408_v2  ;;  %v1491_v2 = vld [vmem:[#allocation4 + $0x58] sm:$0xff] }
 0x3c7   : > { %1432 = vrot.lane.b32.xlu0 %v3436_v47, %s2301_s27  ;;  %1450 = vrot.lane.b32.xlu1 %v3432_v27, %s2302_s17 }
 0x3cb   : > { %1452 = vrot.lane.b32.xlu0 %v3436_v47, %s2302_s17  ;;  %1475 = vrot.lane.b32.xlu1 %v3432_v27, %s2303_s18 }
 0x3cf   : > { %1477 = vrot.lane.b32.xlu0 %v3436_v47, %s2303_s18  ;;  %1500 = vrot.lane.b32.xlu1 %v3432_v27, %s2304_s19 }
 0x3d3   : > { %1502 = vrot.lane.b32.xlu0 %v3436_v47, %s2304_s19  ;;  %1538 = vrot.lane.b32.xlu1 %v3432_v27, %s2305_s20 }
 0x3d7   : > { %1540 = vrot.lane.b32.xlu0 %v3436_v47, %s2305_s20  ;;  %1563 = vrot.lane.b32.xlu1 %v3432_v27, %s2306_s21 }
 0x3db   : > { %1565 = vrot.lane.b32.xlu0 %v3436_v47, %s2306_s21  ;;  %1588 = vrot.lane.b32.xlu1 %v3432_v27, %s3723_s26 }
 0x3df   : > { %1590 = vrot.lane.b32.xlu0 %v3436_v47, %s3723_s26  ;;  %1613 = vrot.lane.b32.xlu1 %v3432_v27, %s3713_s29 }
 0x3e3   : > { %1615 = vrot.lane.b32.xlu0 %v3436_v47, %s3713_s29  ;;  %1434 = vrot.lane.b32.xlu1 %v3466_v59, %s2301_s27 }
 0x3e7   : > { %1436 = vrot.lane.b32.xlu0 %v3472_v44, %s2301_s27  ;;  %1454 = vrot.lane.b32.xlu1 %v3466_v59, %s2302_s17 }
 0x3eb   : > { %1456 = vrot.lane.b32.xlu0 %v3472_v44, %s2302_s17  ;;  %1479 = vrot.lane.b32.xlu1 %v3466_v59, %s2303_s18 }
 0x3ef   : > { %1481 = vrot.lane.b32.xlu0 %v3472_v44, %s2303_s18  ;;  %1504 = vrot.lane.b32.xlu1 %v3466_v59, %s2304_s19 }
 0x3f3   : > { %1506 = vrot.lane.b32.xlu0 %v3472_v44, %s2304_s19  ;;  %1542 = vrot.lane.b32.xlu1 %v3466_v59, %s2305_s20 }
 0x3f7   : > { %1544 = vrot.lane.b32.xlu0 %v3472_v44, %s2305_s20  ;;  %1567 = vrot.lane.b32.xlu1 %v3466_v59, %s2306_s21 }
 0x3fb   : > { %1569 = vrot.lane.b32.xlu0 %v3472_v44, %s2306_s21  ;;  %1592 = vrot.lane.b32.xlu1 %v3466_v59, %s3723_s26 }
 0x3ff   : > { %1594 = vrot.lane.b32.xlu0 %v3472_v44, %s3723_s26  ;;  %1617 = vrot.lane.b32.xlu1 %v3466_v59, %s3713_s29 }
 0x403   : > { %1619 = vrot.lane.b32.xlu0 %v3472_v44, %s3713_s29 }
 0x435   : > { %v1431_v31 = vpop.permute.xlu1 %1430 }
 0x439   : > { %v1433_v46 = vpop.permute.xlu0 %1432  ;;  %v1451_v40 = vpop.permute.xlu1 %1450 }
 0x43d   : > { %v1453_v16 = vpop.permute.xlu0 %1452  ;;  %v1476_v9 = vpop.permute.xlu1 %1475 }
 0x441   : > { %v1478_v17 = vpop.permute.xlu0 %1477  ;;  %v1501_v52 = vpop.permute.xlu1 %1500 }
 0x445   : > { %v3504_v1 = vpop.permute.xlu0 %1502  ;;  %v3506_v5 = vpop.permute.xlu1 %1538 }
 0x449   : > { %v3508_v26 = vpop.permute.xlu0 %1540  ;;  %v3510_v41 = vpop.permute.xlu1 %1563 }
 0x44d   : > { %v3512_v51 = vpop.permute.xlu0 %1565  ;;  %v3514_v10 = vpop.permute.xlu1 %1588 }
 0x451   : > { %v3516_v24 = vpop.permute.xlu0 %1590  ;;  %v3518_v22 = vpop.permute.xlu1 %1613 }
 0x455   : > { %v3520_v42 = vpop.permute.xlu0 %1615  ;;  %v1435_v0 = vpop.permute.xlu1 %1434 }
 0x456   : > { %v1438_v56 = vsel %vm587_vm1, %v1431_v31, %v1435_v0  ;;  %v1440_v7 = vsel %vm587_vm1, %v1435_v0, %v1431_v31 }
 0x457   : > { %v1446_v14 = vmul.f32 %v1442_v45, %v1440_v7  ;;  %v1447_v20 = vmul.f32 %v1443_v39, %v1438_v56  ;;  %v1516_v45 = vld [vmem:[#allocation4 + $0x78] sm:$0xff] }
 0x459   : > { %v1437_v60 = vpop.permute.xlu0 %1436  ;;  %v1455_v36 = vpop.permute.xlu1 %1454 }
 0x45a   : > { %v1458_v37 = vsel %vm628_vm0, %v1451_v40, %v1455_v36  ;;  %v1460_v6 = vsel %vm628_vm0, %v1455_v36, %v1451_v40  ;;  %v1439_v18 = vsel %vm587_vm1, %v1433_v46, %v1437_v60  ;;  %v1441_v19 = vsel %vm587_vm1, %v1437_v60, %v1433_v46 }
 0x45b   : > { %v1467_v43 = vmul.f32 %v1463_v38, %v1460_v6  ;;  %v1468_v13 = vmul.f32 %v1464_v30, %v1458_v37  ;;  %v1448_v33 = vmul.f32 %v1444_v12, %v1441_v19  ;;  %v1449_v35 = vmul.f32 %v1445_v34, %v1439_v18  ;;  %v1515_v6 = vld [vmem:[#allocation4 + $0x70] sm:$0xff]  ;;  %v1526_v12 = vld [vmem:[#allocation4 + $0x80] sm:$0xff]  ;;  %v1527_v34 = vld [vmem:[#allocation4 + $0x88] sm:$0xff] }
 0x45d   : > { %v1457_v61 = vpop.permute.xlu0 %1456  ;;  %v1480_v62 = vpop.permute.xlu1 %1479  ;;  %v1471_v23 = vadd.f32 %v1467_v43, %v1446_v14  ;;  %v1472_v21 = vadd.f32 %v1468_v13, %v1447_v20  ;;  %v1552_v14 = vld [vmem:[#allocation4 + $0xa8] sm:$0xff] }
 0x45e   : > { %v1459_v53 = vsel %vm628_vm0, %v1453_v16, %v1457_v61  ;;  %v1461_v15 = vsel %vm628_vm0, %v1457_v61, %v1453_v16  ;;  %v1483_v28 = vsel %vm678_vm2, %v1476_v9, %v1480_v62  ;;  %v1485_v11 = vsel %vm678_vm2, %v1480_v62, %v1476_v9  ;;  %v1528_v62 = vld [vmem:[#allocation4 + $0x90] sm:$0xff] }
 0x45f   : > { %v1469_v3 = vmul.f32 %v1465_v57, %v1461_v15  ;;  %v1470_v50 = vmul.f32 %v1466_v48, %v1459_v53  ;;  %v1492_v4 = vmul.f32 %v1488_v55, %v1485_v11  ;;  %v1493_v8 = vmul.f32 %v1489_v58, %v1483_v28  ;;  %v1529_v53 = vld [vmem:[#allocation4 + $0x98] sm:$0xff]  ;;  %v1551_v11 = vld [vmem:[#allocation4 + $0xa0] sm:$0xff] }
 0x460   : > { %v1531_v15 = vmul.f32 %v1527_v34, %v3466_v59  ;;  %v1530_v55 = vmul.f32 %v1526_v12, %v3432_v27  ;;  %v1554_v59 = vld [vmem:[#allocation4 + $0xb8] sm:$0xff]  ;;  %v1532_v27 = vmul.f32 %v1528_v62, %v3436_v47 }
 0x461   : > { %v1482_v63 = vpop.permute.xlu0 %1481  ;;  %v1505_v31 = vpop.permute.xlu1 %1504  ;;  %v1473_v30 = vadd.f32 %v1469_v3, %v1448_v33  ;;  %v1474_v37 = vadd.f32 %v1470_v50, %v1449_v35  ;;  %v1496_v39 = vadd.f32 %v1492_v4, %v1471_v23  ;;  %v1497_v56 = vadd.f32 %v1493_v8, %v1472_v21  ;;  %v1553_v3 = vld [vmem:[#allocation4 + $0xb0] sm:$0xff] }
 0x462   : > { %v1484_v46 = vsel %vm678_vm2, %v1478_v17, %v1482_v63  ;;  %v1486_v40 = vsel %vm678_vm2, %v1482_v63, %v1478_v17  ;;  %v1508_v16 = vsel %vm728_vm3, %v1501_v52, %v1505_v31  ;;  %v1510_v9 = vsel %vm728_vm3, %v1505_v31, %v1501_v52  ;;  %v1576_v63 = vld [vmem:[#allocation4 + $0xc0] sm:$0xff]  ;;  %v1577_v31 = vld [vmem:[#allocation4 + $0xc8] sm:$0xff] }
 0x463   : > { %v1494_v0 = vmul.f32 %v1490_v25, %v1486_v40  ;;  %v1495_v60 = vmul.f32 %v1491_v2, %v1484_v46  ;;  %v1517_v36 = vmul.f32 %v1513_v29, %v1510_v9  ;;  %v1518_v38 = vmul.f32 %v1514_v54, %v1508_v16  ;;  %v1578_v16 = vld [vmem:[#allocation4 + $0xd0] sm:$0xff]  ;;  %v1579_v9 = vld [vmem:[#allocation4 + $0xd8] sm:$0xff] }
 0x464   : > { %v1533_v35 = vmul.f32 %v1529_v53, %v3472_v44 }
 0x465   : > { %v1507_v7 = vpop.permute.xlu0 %1506  ;;  %v1543_v17 = vpop.permute.xlu1 %1542  ;;  %v1498_v18 = vadd.f32 %v1494_v0, %v1473_v30  ;;  %v1499_v19 = vadd.f32 %v1495_v60, %v1474_v37  ;;  %v1521_v13 = vadd.f32 %v1517_v36, %v1496_v39  ;;  %v1522_v57 = vadd.f32 %v1518_v38, %v1497_v56  ;;  %v1601_v36 = vld [vmem:[#allocation4 + $0xe0] sm:$0xff]  ;;  %v1602_v38 = vld [vmem:[#allocation4 + $0xe8] sm:$0xff]  ;;  %v1603_v56 = vld [vmem:[#allocation4 + $0xf0] sm:$0xff] }
 0x466   : > { %v1509_v52 = vsel %vm728_vm3, %v3504_v1, %v1507_v7  ;;  %v1511_v43 = vsel %vm728_vm3, %v1507_v7, %v3504_v1  ;;  %v1546_v20 = vsel %vm803_vm4, %v3506_v5, %v1543_v17  ;;  %v1548_v1 = vsel %vm803_vm4, %v1543_v17, %v3506_v5  ;;  %v1604_v7 = vld [vmem:[#allocation4 + $0xf8] sm:$0xff] }
 0x467   : > { %v1519_v48 = vmul.f32 %v1515_v6, %v1511_v43  ;;  %v1520_v61 = vmul.f32 %v1516_v45, %v1509_v52  ;;  %v1535_v29 = vadd.f32 %v1531_v15, %v1522_v57  ;;  %v1534_v54 = vadd.f32 %v1530_v55, %v1521_v13  ;;  %v1626_v57 = vld [vmem:[#allocation4 + $0x100] sm:$0xff] }
 0x468   : > { %v1555_v23 = vmul.f32 %v1551_v11, %v1546_v20  ;;  %v1556_v5 = vmul.f32 %v1552_v14, %v1548_v1  ;;  %v1629_v11 = vld [vmem:[#allocation4 + $0x118] sm:$0xff] }
 0x469   : > { %v1523_v58 = vadd.f32 %v1519_v48, %v1498_v18  ;;  %v1524_v28 = vadd.f32 %v1520_v61, %v1499_v19  ;;  %v1545_v25 = vpop.permute.xlu0 %1544  ;;  %v1568_v33 = vpop.permute.xlu1 %1567  ;;  %v1627_v48 = vld [vmem:[#allocation4 + $0x108] sm:$0xff] }
 0x46a   : > { %v1547_v50 = vsel %vm803_vm4, %v3508_v26, %v1545_v25  ;;  %v1549_v2 = vsel %vm803_vm4, %v1545_v25, %v3508_v26  ;;  %v1571_v47 = vsel %vm853_vm5, %v3510_v41, %v1568_v33  ;;  %v1573_v46 = vsel %vm853_vm5, %v1568_v33, %v3510_v41 }
 0x46b   : > { %v1537_v21 = vadd.f32 %v1533_v35, %v1524_v28  ;;  %v1536_v4 = vadd.f32 %v1532_v27, %v1523_v58  ;;  %v1557_v8 = vmul.f32 %v1553_v3, %v1547_v50  ;;  %v1558_v44 = vmul.f32 %v1554_v59, %v1549_v2  ;;  %v1628_v28 = vld [vmem:[#allocation4 + $0x110] sm:$0xff] }
 0x46c   : > { %v1559_v37 = vadd.f32 %v1555_v23, %v1534_v54  ;;  %v1560_v6 = vadd.f32 %v1556_v5, %v1535_v29  ;;  %v1580_v45 = vmul.f32 %v1576_v63, %v1571_v47  ;;  %v1581_v39 = vmul.f32 %v1577_v31, %v1573_v46 }
 0x46d   : > { %v1570_v40 = vpop.permute.xlu0 %1569  ;;  %v1593_v26 = vpop.permute.xlu1 %1592  ;;  %v1561_v12 = vadd.f32 %v1557_v8, %v1536_v4  ;;  %v1562_v34 = vadd.f32 %v1558_v44, %v1537_v21  ;;  %v1638_v8 = vld [vmem:[%s3648_s9] sm:$0xff] }
 0x46e   : > { %v1572_v0 = vsel %vm853_vm5, %v3512_v51, %v1570_v40  ;;  %v1574_v60 = vsel %vm853_vm5, %v1570_v40, %v3512_v51  ;;  %v1596_v30 = vsel %vm903_vm6, %v3514_v10, %v1593_v26  ;;  %v1598_v41 = vsel %vm903_vm6, %v1593_v26, %v3514_v10 }
 0x46f   : > { %v1582_v17 = vmul.f32 %v1578_v16, %v1572_v0  ;;  %v1583_v51 = vmul.f32 %v1579_v9, %v1574_v60  ;;  %v1605_v52 = vmul.f32 %v1601_v36, %v1596_v30  ;;  %v1606_v43 = vmul.f32 %v1602_v38, %v1598_v41 }
 0x470   : > { %v1584_v55 = vadd.f32 %v1580_v45, %v1559_v37  ;;  %v1585_v58 = vadd.f32 %v1581_v39, %v1560_v6 }
 0x471   : > { %v1595_v18 = vpop.permute.xlu0 %1594  ;;  %v1618_v19 = vpop.permute.xlu1 %1617  ;;  %v1586_v14 = vadd.f32 %v1582_v17, %v1561_v12  ;;  %v1587_v20 = vadd.f32 %v1583_v51, %v1562_v34 }
 0x472   : > { %v1597_v13 = vsel %vm903_vm6, %v3516_v24, %v1595_v18  ;;  %v1599_v10 = vsel %vm903_vm6, %v1595_v18, %v3516_v24  ;;  %v1621_v53 = vsel %vm953_vm7, %v3518_v22, %v1618_v19  ;;  %v1623_v15 = vsel %vm953_vm7, %v1618_v19, %v3518_v22 }
 0x473   : > { %v1607_v61 = vmul.f32 %v1603_v56, %v1597_v13  ;;  %v1608_v62 = vmul.f32 %v1604_v7, %v1599_v10  ;;  %v1630_v1 = vmul.f32 %v1626_v57, %v1621_v53  ;;  %v1631_v24 = vmul.f32 %v1627_v48, %v1623_v15 }
 0x474   : > { %v1609_v33 = vadd.f32 %v1605_v52, %v1584_v55  ;;  %v1610_v35 = vadd.f32 %v1606_v43, %v1585_v58 }
 0x475   : > { %v1620_v25 = vpop.permute.xlu0 %1619  ;;  %v1611_v22 = vadd.f32 %v1607_v61, %v1586_v14  ;;  %v1612_v27 = vadd.f32 %v1608_v62, %v1587_v20 }
 0x476   : > { %v1622_v3 = vsel %vm953_vm7, %v3520_v42, %v1620_v25  ;;  %v1624_v59 = vsel %vm953_vm7, %v1620_v25, %v3520_v42  ;;  %v1634_v29 = vadd.f32 %v1630_v1, %v1609_v33  ;;  %v1635_v54 = vadd.f32 %v1631_v24, %v1610_v35 }
 0x477   : > { %v1632_v50 = vmul.f32 %v1628_v28, %v1622_v3  ;;  %v1633_v2 = vmul.f32 %v1629_v11, %v1624_v59 }
 0x479   : > { %v1636_v23 = vadd.f32 %v1632_v50, %v1611_v22  ;;  %v1637_v5 = vadd.f32 %v1633_v2, %v1612_v27  ;;  %v1784_v2 = vld [vmem:[%s3650_s11] sm:$0xf] }
 0x47b   : > { %v2172_v21 = vpack.c.bf16 %v1636_v23, %v1634_v29  ;;  %v2170_v4 = vpack.c.bf16 %v1637_v5, %v1635_v54 }
 0x47d   : > { %2171 = vmatprep.subr.bf16.mxu1 %v2170_v4  ;;  %v1783_v4 = vld [vmem:[%s3649_s10] sm:$0xf] }
 0x47e   : > { %2173 = vmatpush1.bf16.msra.mxu1 %v2172_v21 }
 0x481   : > { %2139 = vmatmul.mubr.msk.f32.vlgmr.msra.gmra.mrb[4].mxu1 %vm1326_vm9, %v1638_v8 }
 0x482   : > { %1716 = vmatprep.mubr.f32.mxu1 %v3712_v32 }
 0x485   : > { %2140 = vmatmul.mubr.msk.f32.gmra.mrb[6].mxu1 %vm1326_vm9, %v1639_v49 }
 0x486   : > { %1946 = vmatprep.mubr.f32.mxu1 %v3712_v32 }
 0x554   : > { %v1712_v42 = vpop.f32.mrb[4].mxu1 }
 0x555   : > { %v1714_v44 = vpop.f32.mrb[5].mxu1 }
 0x556   : > { %v1723_v63 = vadd.f32 %v1714_v44, %v1712_v42 }
 0x558   : > { %1724 = vadd.xlane.f32.xlu1 %v1723_v63  ;;  %v1718_v31 = vpop.f32.mrb[6].mxu1 }
 0x559   : > { %v1720_v47 = vpop.f32.mrb[7].mxu1 }
 0x55a   : > { %v1726_v46 = vadd.f32 %v1720_v47, %v1718_v31 }
 0x55c   : > { %1727 = vadd.xlane.f32.xlu0 %v1726_v46  ;;  %v1866_v46 = vld [vmem:[%s3651_s12] sm:$0xff] }
 0x5e5   : > { %v1725_v40 = vpop.xlane.xlu1 %1724 }
 0x5e6   : > { %v1729_v26 = vmul.f32 0.00390625, %v1725_v40  ;;  %v1867_v40 = vld [vmem:[%s3651_s12 + $0x8] sm:$0xff] }
 0x5e8   : > { %v1731_v16 = vsub.f32 %v1712_v42, %v1729_v26  ;;  %v1732_v9 = vsub.f32 %v1714_v44, %v1729_v26 }
 0x5e9   : > { %v1728_v0 = vpop.xlane.xlu0 %1727 }
 0x5ea   : > { %v1735_v60 = vmul.f32 %v1731_v16, %v1731_v16  ;;  %v1736_v36 = vmul.f32 %v1732_v9, %v1732_v9  ;;  %v1730_v38 = vmul.f32 0.00390625, %v1728_v0 }
 0x5ec   : > { %v1733_v30 = vsub.f32 %v1718_v31, %v1730_v38  ;;  %v1734_v41 = vsub.f32 %v1720_v47, %v1730_v38  ;;  %v1739_v37 = vadd.f32 %v1736_v36, %v1735_v60 }
 0x5ee   : > { %v1737_v6 = vmul.f32 %v1733_v30, %v1733_v30  ;;  %v1738_v45 = vmul.f32 %v1734_v41, %v1734_v41  ;;  %1740 = vadd.xlane.f32.xlu0 %v1739_v37 }
 0x5f0   : > { %v1742_v39 = vadd.f32 %v1738_v45, %v1737_v6 }
 0x5f2   : > { %1743 = vadd.xlane.f32.xlu1 %v1742_v39 }
 0x67b   : > { %v1741_v56 = vpop.xlane.xlu0 %1740 }
 0x67c   : > { %v1745_v7 = vmul.f32 0.00390625, %v1741_v56 }
 0x67e   : > { %v1747_v12 = vadd.f32 1e-05, %v1745_v7 }
 0x67f   : > { %v1744_v34 = vpop.xlane.xlu1 %1743 }
 0x680   : > { %2221 = vrsqrt.f32 %v1747_v12  ;;  %v1746_v17 = vmul.f32 0.00390625, %v1744_v34 }
 0x682   : > { %v1748_v51 = vadd.f32 1e-05, %v1746_v17 }
 0x684   : > { %2223 = vrsqrt.f32 %v1748_v51 }
 0x68a   : > { %v2222_v18 = vpop.eup %2221 }
 0x68b   : > { %v1751_v19 = vmul.f32 %v2222_v18, %v1731_v16  ;;  %v1752_v52 = vmul.f32 %v2222_v18, %v1732_v9 }
 0x68d   : > { %v1755_v43 = vadd.f32 3.0, %v1751_v19  ;;  %v1756_v13 = vadd.f32 3.0, %v1752_v52 }
 0x68e   : > { %v2224_v10 = vpop.eup %2223 }
 0x68f   : > { %v1759_v57 = vmax.f32 %v1755_v43, 0.0  ;;  %v1760_v48 = vmax.f32 %v1756_v13, 0.0  ;;  %v1753_v61 = vmul.f32 %v2224_v10, %v1733_v30  ;;  %v1754_v62 = vmul.f32 %v2224_v10, %v1734_v41 }
 0x691   : > { %v1763_v53 = vmin.f32 %v1759_v57, 6.0  ;;  %v1764_v15 = vmin.f32 %v1760_v48, 6.0  ;;  %v1757_v55 = vadd.f32 3.0, %v1753_v61  ;;  %v1758_v58 = vadd.f32 3.0, %v1754_v62 }
 0x693   : > { %v1767_v28 = vmul.f32 0.16666667, %v1763_v53  ;;  %v1768_v11 = vmul.f32 0.16666667, %v1764_v15  ;;  %v1761_v14 = vmax.f32 %v1757_v55, 0.0  ;;  %v1762_v20 = vmax.f32 %v1758_v58, 0.0 }
 0x695   : > { %v1771_v1 = vmul.f32 %v1767_v28, %v1751_v19  ;;  %v1772_v24 = vmul.f32 %v1768_v11, %v1752_v52  ;;  %v1765_v25 = vmin.f32 %v1761_v14, 6.0  ;;  %v1766_v33 = vmin.f32 %v1762_v20, 6.0 }
 0x697   : > { %v1775_v35 = vadd.f32 %v1772_v24, %v1771_v1  ;;  %v1769_v3 = vmul.f32 0.16666667, %v1765_v25  ;;  %v1770_v59 = vmul.f32 0.16666667, %v1766_v33 }
 0x699   : > { %1776 = vadd.xlane.f32.xlu0 %v1775_v35  ;;  %v1773_v22 = vmul.f32 %v1769_v3, %v1753_v61  ;;  %v1774_v27 = vmul.f32 %v1770_v59, %v1754_v62 }
 0x69b   : > { %v1778_v50 = vadd.f32 %v1774_v27, %v1773_v22 }
 0x69d   : > { %1779 = vadd.xlane.f32.xlu1 %v1778_v50 }
 0x6af   : > { %1787 = vperm.xlu0 %2219, %v1784_v2  }
 0x726   : > { %v1777_v29 = vpop.xlane.xlu0 %1776 }
 0x727   : > { %v1781_v23 = vmul.f32 0.00390625, %v1777_v29 }
 0x72a   : > { %v1780_v54 = vpop.xlane.xlu1 %1779 }
 0x72b   : > { %v1782_v5 = vmul.f32 0.00390625, %v1780_v54 }
 0x72d   : > { %v2174_v21 = vpack.c.bf16 %v1782_v5, %v1781_v23 }
 0x72e   : > { %v1788_v8 = vpop.permute.xlu0 %1787 }
 0x72f   : > { %2175 = vmatprep.subr.bf16.mxu0 %v2174_v21 }
 0x730   : > { %2177 = vmatpush1.bf16.msra.mxu0 %v2174_v21 }
 0x733   : > { %2141 = vmatmul.mubr.msk.f32.vlgmr.msra.gmra.mrb[8].mxu0 %vm1326_vm9, %v1783_v4 }
 0x806   : > { %v1859_v49 = vpop.f32.mrb[8].mxu0 }
 0x807   : > { %v1860_v42 = vadd.f32 %v1859_v49, %v1788_v8  ;;  %v1861_v44 = vpop.f32.mrb[9].mxu0 }
 0x808   : > { %v1862_v63 = vadd.f32 %v1861_v44, %v1788_v8 }
 0x809   : > { %v1864_v47 = vmax.f32 %v1860_v42, 0.0 }
 0x80a   : > { %v1865_v31 = vmax.f32 %v1862_v63, 0.0 }
 0x80c   : > { %2142 = vmatprep.subr.msk.mxu1 %vm1875_vm10, %v1865_v31 }
 0x80d   : > { %2143 = vmatpush1.msk.msra.mxu1 %vm1875_vm10, %v1864_v47 }
 0x80e   : > { %2144 = vmatmul.mubr.msk.f32.vlgmr.msra.gmra.mrb[8].mxu1 %vm1868_vm11, %v1866_v46 }
 0x80f   : > { %1952 = vmatprep.mubr.f32.mxu1 %v3712_v32 }
 0x812   : > { %2145 = vmatmul.mubr.msk.f32.gmra.mrb[10].mxu1 %vm1868_vm11, %v1867_v40 }
 0x8e1   : > { %v1948_v26 = vpop.f32.mrb[8].mxu1 }
 0x8e2   : > { %v1949_v16 = vadd.f32 3.0, %v1948_v26  ;;  %v1950_v9 = vpop.f32.mrb[9].mxu1 }
 0x8e3   : > { %v1951_v0 = vadd.f32 3.0, %v1950_v9 }
 0x8e4   : > { %v1959_v60 = vmax.f32 %v1949_v16, 0.0 }
 0x8e5   : > { %v1960_v36 = vmax.f32 %v1951_v0, 0.0  ;;  %v1954_v38 = vpop.f32.mrb[10].mxu1 }
 0x8e6   : > { %v1963_v30 = vmin.f32 %v1959_v60, 6.0  ;;  %v1955_v41 = vadd.f32 3.0, %v1954_v38  ;;  %v1956_v37 = vpop.f32.mrb[11].mxu1 }
 0x8e7   : > { %v1964_v6 = vmin.f32 %v1960_v36, 6.0  ;;  %v1957_v32 = vadd.f32 3.0, %v1956_v37 }
 0x8e8   : > { %v1967_v45 = vmul.f32 0.16666667, %v1963_v30  ;;  %v1961_v39 = vmax.f32 %v1955_v41, 0.0 }
 0x8e9   : > { %v1968_v56 = vmul.f32 0.16666667, %v1964_v6  ;;  %v1962_v7 = vmax.f32 %v1957_v32, 0.0 }
 0x8ea   : > { %v1971_v12 = vmul.f32 %v1967_v45, %v1771_v1  ;;  %v1965_v34 = vmin.f32 %v1961_v39, 6.0 }
 0x8eb   : > { %v1972_v17 = vmul.f32 %v1968_v56, %v1772_v24  ;;  %v1966_v51 = vmin.f32 %v1962_v7, 6.0 }
 0x8ec   : > { %1975 = vst [vmem:[%s3426_s22 + $0x20] sm:$0xff] %v1971_v12  ;;  %v1969_v18 = vmul.f32 0.16666667, %v1965_v34 }
 0x8ed   : > { %1976 = vst [vmem:[%s3426_s22 + $0x28] sm:$0xff] %v1972_v17  ;;  %v1970_v19 = vmul.f32 0.16666667, %v1966_v51 }
 0x8ee   : > { %v1973_v52 = vmul.f32 %v1969_v18, %v1773_v22 }
 0x8ef   : > { %v1974_v43 = vmul.f32 %v1970_v19, %v1774_v27 }
 0x8f0   : > { %1977 = vst [vmem:[%s3426_s22 + $0x30] sm:$0xff] %v1973_v52 }
 0x8f1   : > { %1978 = vst [vmem:[%s3426_s22 + $0x38] sm:$0xff] %v1974_v43 }
 0x8f2 PF: > { %s25_s25 = sadd.s32 1, %s2295_s25  }
 0x8f3   : > { %p22_p5 = scmp.ge.s32.totalorder %s25_s25, 4  }
 0x8f5   :  { %24 = sbr.rel (!%p22_p5) target bundleno = 2 (0x2), region = 135 }
 0x8fc   :  { %2000 = vsyncpa [#allocation3], 1 }
 0x8fd   :  { %2002 = vsyncpa [#allocation3 + $0x1], 1 }
 0x8fe   :  { %2003 = vsyncpa [#allocation5], 1 }

</bundles_post_ra>
